<compile_context>
chip_gen: v6e
topology: v6e:2x2x1
jax: 0.10.0
libtpu: 0.0.40
codegen_flags: <defaults>
</compile_context>

<pallas_src>
import jax
import jax.numpy as jnp
from jax import lax
from jax.experimental import pallas as pl
from jax.experimental.pallas import tpu as pltpu


def _make_cross_att_kernel(C, HW, tq, cache_proj):
    Ck = C // 4
    Cq = C // 8
    n_vk = C + Ck

    def kernel(x1_ref, x2_ref, w1_ref, b1_ref, w2_ref, b2_ref, gamma_ref,
               o1_ref, o2_ref, v_sc, k_sc, q_sc):
        cdt = v_sc.dtype                                   # MXU operand dtype
        q0 = pl.multiple_of(pl.program_id(1) * tq, tq)

        def project(x_ref, w_ref, b_ref, idx):
            # One fused [v; k; q] projection over the full pixel axis.
            x = x_ref[0].astype(cdt)                                  # (C, HW)
            p = jnp.dot(w_ref[...], x, preferred_element_type=jnp.float32)
            p = (p + b_ref[...]).astype(cdt)                # (C + C/4 + C/8, HW)
            v_sc[idx] = p[0:C, :]                                     # values
            k_sc[:, idx * HW:(idx + 1) * HW] = p[C:n_vk, :]           # keys
            q_sc[idx * Cq:(idx + 1) * Cq, :] = p[n_vk:n_vk + Cq, :]   # queries

        def project_both():
            project(x1_ref, w1_ref, b1_ref, 0)
            project(x2_ref, w2_ref, b2_ref, 1)

        if cache_proj:
            # Projection cached across the qi axis (axis 1 is "arbitrary").
            @pl.when(pl.program_id(1) == 0)
            def _():
                project_both()
        else:
            project_both()

        gamma = gamma_ref[0]                               # scalar from SMEM
        q_t = q_sc[:, pl.ds(q0, tq)]                       # (C/4, tq)

        # Merged score matmul against [k1 | k2]:
        #   att[i, j] = sum_c q[c, i] * k[c, j]            (== torch.bmm(q, k))
        att = lax.dot_general(q_t, k_sc[...], (((0,), (0,)), ((), ())),
                              preferred_element_type=jnp.float32)   # (tq, 2*HW)

        def branch(att_b, idx, x_ref, o_ref):
            # Softmax over the key axis, f32 math, EUP reciprocal.
            m = jnp.max(att_b, axis=-1, keepdims=True)
            e = jnp.exp(att_b - m)
            denom = jnp.sum(e, axis=-1, keepdims=True)
            p = (e * pl.reciprocal(denom, approx=True)).astype(cdt)
            # out[c, i] = sum_j v[c, j] * p[i, j]          (== torch.bmm(v, att^T))
            out = lax.dot_general(v_sc[idx], p, (((1,), (1,)), ((), ())),
                                  preferred_element_type=jnp.float32)  # (C, tq)
            x_t = x_ref[0, :, pl.ds(q0, tq)].astype(jnp.float32)
            o_ref[0] = (gamma * out + x_t).astype(o_ref.dtype)

        branch(att[:, 0:HW], 0, x1_ref, o1_ref)
        branch(att[:, HW:2 * HW], 1, x2_ref, o2_ref)

    return kernel


def _pick_q_tile(hw, max_tq):
    """Largest 128-multiple <= max_tq dividing hw, else the full hw."""
    if hw <= max_tq or hw % 128 != 0:
        return hw
    t = (min(max_tq, hw) // 128) * 128
    while t >= 128:
        if hw % t == 0:
            return t
        t -= 128
    return hw


def _vmem_capacity_bytes():
    try:
        return int(pltpu.get_tpu_info().vmem_capacity_bytes)
    except Exception:
        return 128 * 1024 * 1024


def cross_att(input1, input2, fused_params, *, max_tq=None, use_bf16_compute=True,
              vmem_limit_bytes=None):
    """input1/input2: (B, C, H, W). Returns (out1, out2) in NCHW."""
    w1, b1, w2, b2, gamma = fused_params
    B, C, H, W = input1.shape
    HW = H * W
    assert C % 8 == 0, "in_channels must be divisible by 8 (C//8 query channels)"
    # C % 64 == 0 is preferred so the q/k row slices stay sublane (8) aligned.

    in_dtype = input1.dtype
    compute_dtype = (jnp.bfloat16 if (use_bf16_compute and in_dtype == jnp.float32)
                     else in_dtype)

    # NCHW -> (B, C, HW): pure reshape, no transpose; lanes carry pixels.
    x1 = input1.reshape(B, C, HW)
    x2 = input2.reshape(B, C, HW)

    w1 = w1.astype(compute_dtype)
    w2 = w2.astype(compute_dtype)
    b1 = b1.astype(jnp.float32)
    b2 = b2.astype(jnp.float32)
    gamma = gamma.reshape(1).astype(jnp.float32)

    # Chip-aware VMEM / tile budget: ~56 MiB + tq<=256 on v7x (64 MiB VMEM),
    # ~112 MiB + tq<=1024 on v5e/v6e (128 MiB VMEM).
    vmem_cap = _vmem_capacity_bytes()
    if vmem_limit_bytes is None:
        vmem_limit_bytes = min(int(vmem_cap * 7 // 8), 112 * 1024 * 1024)
    if max_tq is None:
        max_tq = 256 if vmem_cap <= 64 * 1024 * 1024 else 1024
    # Keep the (tq, 2*HW) f32 score block plus ~3 softmax temporaries inside
    # about half of the VMEM budget.
    score_cap = (vmem_limit_bytes // 2) // (2 * HW * 4 * 4)
    max_tq = max(128, min(max_tq, score_cap))

    tq = _pick_q_tile(HW, max_tq)
    nq = HW // tq

    # Cache the full-HW projection across query tiles whenever the batch axis
    # can still feed megacore parallelism (B >= 2) or there is a single tile;
    # otherwise (B == 1, multi-tile) keep qi "parallel" and recompute per tile.
    cache_proj = (B >= 2) or (nq == 1)
    qi_sem = "arbitrary" if (cache_proj and nq > 1) else "parallel"

    Ck = C // 4
    kernel = _make_cross_att_kernel(C, HW, tq, cache_proj)

    x_spec = pl.BlockSpec((1, C, HW), lambda b, qi: (b, 0, 0))
    out_spec = pl.BlockSpec((1, C, tq), lambda b, qi: (b, 0, qi))
    w_spec = pl.BlockSpec(w1.shape, lambda b, qi: (0, 0))
    b_spec = pl.BlockSpec(b1.shape, lambda b, qi: (0, 0))
    gamma_spec = pl.BlockSpec(memory_space=pltpu.MemorySpace.SMEM)

    # Cached v1/v2 values, [k1 | k2] keys, and concatenated q, all in MXU dtype.
    scratch = [pltpu.VMEM((2, C, HW), compute_dtype),
               pltpu.VMEM((Ck, 2 * HW), compute_dtype),
               pltpu.VMEM((Ck, HW), compute_dtype)]

    itemsize = jnp.dtype(in_dtype).itemsize
    w_itemsize = jnp.dtype(compute_dtype).itemsize
    flops = int(B * (5.5 * C * C * HW + 5.0 * C * HW * HW))
    transcendentals = int(2 * B * HW * HW)
    bytes_accessed = int(4 * B * C * HW * itemsize
                         + 2 * (C + Ck + C // 8) * C * w_itemsize)

    out1, out2 = pl.pallas_call(
        kernel,
        out_shape=(jax.ShapeDtypeStruct((B, C, HW), in_dtype),
                   jax.ShapeDtypeStruct((B, C, HW), input2.dtype)),
        grid_spec=pltpu.PrefetchScalarGridSpec(
            num_scalar_prefetch=0,
            grid=(B, nq),
            in_specs=[x_spec, x_spec, w_spec, b_spec, w_spec, b_spec, gamma_spec],
            out_specs=[out_spec, out_spec],
            scratch_shapes=scratch),
        compiler_params=pltpu.CompilerParams(
            dimension_semantics=("parallel", qi_sem),
            vmem_limit_bytes=int(vmem_limit_bytes)),
        cost_estimate=pl.CostEstimate(flops=flops,
                                      transcendentals=transcendentals,
                                      bytes_accessed=bytes_accessed),
    )(x1, x2, w1, b1, w2, b2, gamma)

    return out1.reshape(B, C, H, W), out2.reshape(B, C, H, W)


def init_params(key, C):
    """Deterministic synthetic parameters (shapes match the PyTorch module)."""
    ks = jax.random.split(key, 12)

    def conv_w(k, out_c, in_c):
        return jax.random.normal(k, (out_c, in_c), jnp.float32) * 0.1

    def conv_b(k, out_c):
        return jax.random.normal(k, (out_c,), jnp.float32) * 0.01

    wq1, bq1 = conv_w(ks[0], C // 8, C), conv_b(ks[1], C // 8)
    wk1, bk1 = conv_w(ks[2], C // 4, C), conv_b(ks[3], C // 4)
    wv1, bv1 = conv_w(ks[4], C, C), conv_b(ks[5], C)
    wq2, bq2 = conv_w(ks[6], C // 8, C), conv_b(ks[7], C // 8)
    wk2, bk2 = conv_w(ks[8], C // 4, C), conv_b(ks[9], C // 4)
    wv2, bv2 = conv_w(ks[10], C, C), conv_b(ks[11], C)
    # PyTorch initializes gamma to 0 (out == input); use a nonzero value so the
    # attention path is actually exercised.
    gamma = jnp.full((1,), 0.5, jnp.float32)
    return (wq1, bq1, wk1, bk1, wv1, bv1,
            wq2, bq2, wk2, bk2, wv2, bv2, gamma)


def fuse_params(params):
    """Concatenate per-input q/k/v 1x1-conv weights into one matrix + bias col.

    Row order [value; key; query] keeps every in-kernel row-slice start at a
    sublane multiple (0, C, C + C//4) when C is a multiple of 32/64.
    """
    (wq1, bq1, wk1, bk1, wv1, bv1,
     wq2, bq2, wk2, bk2, wv2, bv2, gamma) = params
    w1 = jnp.concatenate([wv1, wk1, wq1], axis=0)
    b1 = jnp.concatenate([bv1, bk1, bq1], axis=0)[:, None]
    w2 = jnp.concatenate([wv2, wk2, wq2], axis=0)
    b2 = jnp.concatenate([bv2, bk2, bq2], axis=0)[:, None]
    return w1, b1, w2, b2, gamma


def cross_att_reference(input1, input2, params):
    """Pure-JAX reference matching the PyTorch forward semantics (f32 math)."""
    (wq1, bq1, wk1, bk1, wv1, bv1,
     wq2, bq2, wk2, bk2, wv2, bv2, gamma) = params
    B, C, H, W = input1.shape
    HW = H * W
    hi = lax.Precision.HIGHEST

    def conv1x1(x, w, b):  # x: (B,C,H,W), w: (O,C), b: (O,)
        return jnp.einsum('bchw,oc->bohw', x, w, precision=hi) + b[None, :, None, None]

    q1 = conv1x1(input1, wq1, bq1)
    k1 = conv1x1(input1, wk1, bk1).reshape(B, -1, HW)
    v1 = conv1x1(input1, wv1, bv1).reshape(B, -1, HW)
    q2 = conv1x1(input2, wq2, bq2)
    k2 = conv1x1(input2, wk2, bk2).reshape(B, -1, HW)
    v2 = conv1x1(input2, wv2, bv2).reshape(B, -1, HW)

    q = jnp.concatenate([q1, q2], axis=1).reshape(B, -1, HW).transpose(0, 2, 1)
    g = gamma[0]

    def branch(k, v, x):
        a = jax.nn.softmax(jnp.einsum('bic,bcj->bij', q, k, precision=hi), axis=-1)
        out = jnp.einsum('bcj,bij->bci', v, a, precision=hi).reshape(B, C, H, W)
        return g * out + x

    return branch(k1, v1, input1), branch(k2, v2, input2)


if __name__ == "__main__":
    # Small demo: C=64 keeps every fused-weight row slice sublane aligned
    # (C, C/4, C/8 all multiples of 8); HW = 16*16 = 256 -> two 128-wide query
    # tiles, exercising the cached-projection ("arbitrary" qi axis) path.
    B, C, H, W = 2, 64, 16, 16
    key = jax.random.PRNGKey(0)
    k1, k2, k3 = jax.random.split(key, 3)

    input1 = jax.random.normal(k1, (B, C, H, W), jnp.float32)
    input2 = jax.random.normal(k2, (B, C, H, W), jnp.float32)
    params = init_params(k3, C)
    fused = fuse_params(params)

    ref1, ref2 = cross_att_reference(input1, input2, params)

    # Performance path: bf16 MXU operands + f32 accumulation, cached projection.
    out1, out2 = cross_att(input1, input2, fused, max_tq=128, use_bf16_compute=True)
    jax.block_until_ready((out1, out2))
    assert out1.shape == input1.shape and out2.shape == input2.shape
    assert jnp.allclose(out1, ref1, atol=7e-2, rtol=7e-2), \
        float(jnp.max(jnp.abs(out1 - ref1)))
    assert jnp.allclose(out2, ref2, atol=7e-2, rtol=7e-2), \
        float(jnp.max(jnp.abs(out2 - ref2)))

    # Near-parity path: f32 MXU operands (tolerance covers only the EUP
    # approximate reciprocal in the softmax normalizer).
    o1f, o2f = cross_att(input1, input2, fused, max_tq=128, use_bf16_compute=False)
    jax.block_until_ready((o1f, o2f))
    assert jnp.allclose(o1f, ref1, atol=2e-3, rtol=2e-3), \
        float(jnp.max(jnp.abs(o1f - ref1)))
    assert jnp.allclose(o2f, ref2, atol=2e-3, rtol=2e-3), \
        float(jnp.max(jnp.abs(o2f - ref2)))

    print("KERNEL_OK")
</pallas_src>

<mosaic_0001>
module attributes {stable_mosaic.version = 11 : i64} {
  func.func @kernel(%arg0: i32, %arg1: i32, %arg2: memref<1x64x256xf32, #tpu.memory_space<vmem>>, %arg3: memref<1x64x256xf32, #tpu.memory_space<vmem>>, %arg4: memref<88x64xbf16, #tpu.memory_space<vmem>>, %arg5: memref<88x1xf32, #tpu.memory_space<vmem>>, %arg6: memref<88x64xbf16, #tpu.memory_space<vmem>>, %arg7: memref<88x1xf32, #tpu.memory_space<vmem>>, %arg8: memref<1xf32, #tpu.memory_space<smem>>, %arg9: memref<1x64x128xf32, #tpu.memory_space<vmem>>, %arg10: memref<1x64x128xf32, #tpu.memory_space<vmem>>, %arg11: memref<2x64x256xbf16, #tpu.memory_space<vmem>>, %arg12: memref<16x512xbf16, #tpu.memory_space<vmem>>, %arg13: memref<16x256xbf16, #tpu.memory_space<vmem>>) attributes {dimension_semantics = [#tpu.dimension_semantics<parallel>, #tpu.dimension_semantics<arbitrary>], iteration_bounds = array<i64: 2, 2>, scalar_prefetch = 0 : i64, scratch_operands = 3 : i64, tpu.core_type = #tpu.core_type<tc>, window_params = [{transform_indices = @transform_0, window_bounds = array<i64: 1, 64, 256>}, {transform_indices = @transform_1, window_bounds = array<i64: 1, 64, 256>}, {pipeline_mode = #tpu.pipeline_mode<synchronous>, transform_indices = @transform_2, window_bounds = array<i64: 88, 64>}, {pipeline_mode = #tpu.pipeline_mode<synchronous>, transform_indices = @transform_3, window_bounds = array<i64: 88, 1>}, {pipeline_mode = #tpu.pipeline_mode<synchronous>, transform_indices = @transform_4, window_bounds = array<i64: 88, 64>}, {pipeline_mode = #tpu.pipeline_mode<synchronous>, transform_indices = @transform_5, window_bounds = array<i64: 88, 1>}, {transform_indices = @transform_6, window_bounds = array<i64: 1>}, {transform_indices = @transform_7, window_bounds = array<i64: 1, 64, 128>}, {transform_indices = @transform_8, window_bounds = array<i64: 1, 64, 128>}]} {
    %c128_i32 = arith.constant 128 : i32
    %0 = arith.muli %arg1, %c128_i32 : i32
    %1 = tpu.assume_multiple %0, 128 : i32
    %c0_i32 = arith.constant 0 : i32
    %2 = arith.cmpi eq, %arg1, %c0_i32 : i32
    %3 = arith.extui %2 : i1 to i32
    %c0_i32_0 = arith.constant 0 : i32
    %4 = arith.cmpi ne, %3, %c0_i32_0 : i32
    scf.if %4 {
      %c0_25 = arith.constant 0 : index
      %c0_26 = arith.constant 0 : index
      %c0_27 = arith.constant 0 : index
      %58 = vector.load %arg2[%c0_25, %c0_26, %c0_27] : memref<1x64x256xf32, #tpu.memory_space<vmem>>, vector<1x64x256xf32>
      %59 = vector.shape_cast %58 : vector<1x64x256xf32> to vector<64x256xf32>
      %60 = arith.truncf %59 : vector<64x256xf32> to vector<64x256xbf16>
      %c0_28 = arith.constant 0 : index
      %c0_29 = arith.constant 0 : index
      %61 = vector.load %arg4[%c0_28, %c0_29] : memref<88x64xbf16, #tpu.memory_space<vmem>>, vector<88x64xbf16>
      %cst_30 = arith.constant dense<0.000000e+00> : vector<88x256xf32>
      %62 = tpu.matmul %61, %60, %cst_30 {dimension_numbers = #tpu.dot_dimension_numbers<[1], [0], [0], [1], [0, 0, 1, 1], [], []>} : vector<88x64xbf16>, vector<64x256xbf16>, vector<88x256xf32> -> vector<88x256xf32>
      %c0_31 = arith.constant 0 : index
      %c0_32 = arith.constant 0 : index
      %63 = vector.load %arg5[%c0_31, %c0_32] : memref<88x1xf32, #tpu.memory_space<vmem>>, vector<88x1xf32>
      %64 = vector.broadcast %63 : vector<88x1xf32> to vector<88x256xf32>
      %65 = arith.addf %62, %64 : vector<88x256xf32>
      %66 = arith.truncf %65 : vector<88x256xf32> to vector<88x256xbf16>
      %67 = vector.extract_strided_slice %66 {offsets = [0, 0], sizes = [64, 256], strides = [1, 1]} : vector<88x256xbf16> to vector<64x256xbf16>
      %c0_33 = arith.constant 0 : index
      %c0_34 = arith.constant 0 : index
      %c0_35 = arith.constant 0 : index
      %68 = vector.load %arg11[%c0_33, %c0_34, %c0_35] : memref<2x64x256xbf16, #tpu.memory_space<vmem>>, vector<1x64x256xbf16>
      %69 = vector.shape_cast %68 : vector<1x64x256xbf16> to vector<64x256xbf16>
      %70 = vector.shape_cast %67 : vector<64x256xbf16> to vector<1x64x256xbf16>
      tpu.vector_store %arg11[%c0_33, %c0_34, %c0_35], %70 {strides = array<i32>} : memref<2x64x256xbf16, #tpu.memory_space<vmem>>, vector<1x64x256xbf16>,
      %71 = vector.extract_strided_slice %66 {offsets = [64, 0], sizes = [16, 256], strides = [1, 1]} : vector<88x256xbf16> to vector<16x256xbf16>
      %c0_36 = arith.constant 0 : index
      %c0_37 = arith.constant 0 : index
      %72 = vector.load %arg12[%c0_36, %c0_37] : memref<16x512xbf16, #tpu.memory_space<vmem>>, vector<16x256xbf16>
      tpu.vector_store %arg12[%c0_36, %c0_37], %71 {strides = array<i32>} : memref<16x512xbf16, #tpu.memory_space<vmem>>, vector<16x256xbf16>,
      %73 = vector.extract_strided_slice %66 {offsets = [80, 0], sizes = [8, 256], strides = [1, 1]} : vector<88x256xbf16> to vector<8x256xbf16>
      %c0_38 = arith.constant 0 : index
      %c0_39 = arith.constant 0 : index
      %74 = vector.load %arg13[%c0_38, %c0_39] : memref<16x256xbf16, #tpu.memory_space<vmem>>, vector<8x256xbf16>
      tpu.vector_store %arg13[%c0_38, %c0_39], %73 {strides = array<i32>} : memref<16x256xbf16, #tpu.memory_space<vmem>>, vector<8x256xbf16>,
      %c0_40 = arith.constant 0 : index
      %c0_41 = arith.constant 0 : index
      %c0_42 = arith.constant 0 : index
      %75 = vector.load %arg3[%c0_40, %c0_41, %c0_42] : memref<1x64x256xf32, #tpu.memory_space<vmem>>, vector<1x64x256xf32>
      %76 = vector.shape_cast %75 : vector<1x64x256xf32> to vector<64x256xf32>
      %77 = arith.truncf %76 : vector<64x256xf32> to vector<64x256xbf16>
      %c0_43 = arith.constant 0 : index
      %c0_44 = arith.constant 0 : index
      %78 = vector.load %arg6[%c0_43, %c0_44] : memref<88x64xbf16, #tpu.memory_space<vmem>>, vector<88x64xbf16>
      %cst_45 = arith.constant dense<0.000000e+00> : vector<88x256xf32>
      %79 = tpu.matmul %78, %77, %cst_45 {dimension_numbers = #tpu.dot_dimension_numbers<[1], [0], [0], [1], [0, 0, 1, 1], [], []>} : vector<88x64xbf16>, vector<64x256xbf16>, vector<88x256xf32> -> vector<88x256xf32>
      %c0_46 = arith.constant 0 : index
      %c0_47 = arith.constant 0 : index
      %80 = vector.load %arg7[%c0_46, %c0_47] : memref<88x1xf32, #tpu.memory_space<vmem>>, vector<88x1xf32>
      %81 = vector.broadcast %80 : vector<88x1xf32> to vector<88x256xf32>
      %82 = arith.addf %79, %81 : vector<88x256xf32>
      %83 = arith.truncf %82 : vector<88x256xf32> to vector<88x256xbf16>
      %84 = vector.extract_strided_slice %83 {offsets = [0, 0], sizes = [64, 256], strides = [1, 1]} : vector<88x256xbf16> to vector<64x256xbf16>
      %c1_48 = arith.constant 1 : index
      %c0_49 = arith.constant 0 : index
      %c0_50 = arith.constant 0 : index
      %85 = vector.load %arg11[%c1_48, %c0_49, %c0_50] : memref<2x64x256xbf16, #tpu.memory_space<vmem>>, vector<1x64x256xbf16>
      %86 = vector.shape_cast %85 : vector<1x64x256xbf16> to vector<64x256xbf16>
      %87 = vector.shape_cast %84 : vector<64x256xbf16> to vector<1x64x256xbf16>
      tpu.vector_store %arg11[%c1_48, %c0_49, %c0_50], %87 {strides = array<i32>} : memref<2x64x256xbf16, #tpu.memory_space<vmem>>, vector<1x64x256xbf16>,
      %88 = vector.extract_strided_slice %83 {offsets = [64, 0], sizes = [16, 256], strides = [1, 1]} : vector<88x256xbf16> to vector<16x256xbf16>
      %c0_51 = arith.constant 0 : index
      %c256 = arith.constant 256 : index
      %89 = vector.load %arg12[%c0_51, %c256] : memref<16x512xbf16, #tpu.memory_space<vmem>>, vector<16x256xbf16>
      tpu.vector_store %arg12[%c0_51, %c256], %88 {strides = array<i32>} : memref<16x512xbf16, #tpu.memory_space<vmem>>, vector<16x256xbf16>,
      %90 = vector.extract_strided_slice %83 {offsets = [80, 0], sizes = [8, 256], strides = [1, 1]} : vector<88x256xbf16> to vector<8x256xbf16>
      %c8 = arith.constant 8 : index
      %c0_52 = arith.constant 0 : index
      %91 = vector.load %arg13[%c8, %c0_52] : memref<16x256xbf16, #tpu.memory_space<vmem>>, vector<8x256xbf16>
      tpu.vector_store %arg13[%c8, %c0_52], %90 {strides = array<i32>} : memref<16x256xbf16, #tpu.memory_space<vmem>>, vector<8x256xbf16>,
    } else {
    }
    %c0 = arith.constant 0 : index
    %5 = memref.load %arg8[%c0] : memref<1xf32, #tpu.memory_space<smem>>
    %c0_1 = arith.constant 0 : index
    %6 = arith.index_cast %1 : i32 to index
    %7 = vector.load %arg13[%c0_1, %6] : memref<16x256xbf16, #tpu.memory_space<vmem>>, vector<16x128xbf16>
    %c0_2 = arith.constant 0 : index
    %c0_3 = arith.constant 0 : index
    %8 = vector.load %arg12[%c0_2, %c0_3] : memref<16x512xbf16, #tpu.memory_space<vmem>>, vector<16x512xbf16>
    %cst = arith.constant dense<0.000000e+00> : vector<128x512xf32>
    %9 = tpu.matmul %7, %8, %cst {dimension_numbers = #tpu.dot_dimension_numbers<[0], [0], [1], [1], [0, 1, 1, 1], [], []>} : vector<16x128xbf16>, vector<16x512xbf16>, vector<128x512xf32> -> vector<128x512xf32>
    %10 = vector.extract_strided_slice %9 {offsets = [0, 0], sizes = [128, 256], strides = [1, 1]} : vector<128x512xf32> to vector<128x256xf32>
    %cst_4 = arith.constant dense<0xFF800000> : vector<128xf32>
    %11 = vector.multi_reduction <maximumf>, %10, %cst_4 [1] : vector<128x256xf32> to vector<128xf32>
    %12 = vector.shape_cast %11 : vector<128xf32> to vector<128x1xf32>
    %13 = vector.broadcast %12 : vector<128x1xf32> to vector<128x256xf32>
    %14 = arith.subf %10, %13 : vector<128x256xf32>
    %15 = math.exp %14 : vector<128x256xf32>
    %cst_5 = arith.constant dense<0.000000e+00> : vector<128xf32>
    %16 = vector.multi_reduction <add>, %15, %cst_5 [1] : vector<128x256xf32> to vector<128xf32>
    %17 = vector.shape_cast %16 : vector<128xf32> to vector<128x1xf32>
    %18 = tpu.reciprocal %17 {approx = true} : vector<128x1xf32> -> vector<128x1xf32>
    %19 = vector.broadcast %18 : vector<128x1xf32> to vector<128x256xf32>
    %20 = arith.mulf %15, %19 : vector<128x256xf32>
    %21 = arith.truncf %20 : vector<128x256xf32> to vector<128x256xbf16>
    %c0_6 = arith.constant 0 : index
    %c0_7 = arith.constant 0 : index
    %c0_8 = arith.constant 0 : index
    %22 = vector.load %arg11[%c0_6, %c0_7, %c0_8] : memref<2x64x256xbf16, #tpu.memory_space<vmem>>, vector<1x64x256xbf16>
    %23 = vector.shape_cast %22 : vector<1x64x256xbf16> to vector<64x256xbf16>
    %cst_9 = arith.constant dense<0.000000e+00> : vector<64x128xf32>
    %24 = tpu.matmul %23, %21, %cst_9 {dimension_numbers = #tpu.dot_dimension_numbers<[1], [1], [0], [0], [0, 0, 1, 0], [], []>} : vector<64x256xbf16>, vector<128x256xbf16>, vector<64x128xf32> -> vector<64x128xf32>
    %c0_10 = arith.constant 0 : index
    %c0_11 = arith.constant 0 : index
    %25 = arith.index_cast %1 : i32 to index
    %26 = vector.load %arg2[%c0_10, %c0_11, %25] : memref<1x64x256xf32, #tpu.memory_space<vmem>>, vector<1x64x128xf32>
    %27 = vector.shape_cast %26 : vector<1x64x128xf32> to vector<64x128xf32>
    %28 = vector.broadcast %5 : f32 to vector<64x128xf32>
    %29 = arith.mulf %28, %24 : vector<64x128xf32>
    %30 = arith.addf %29, %27 : vector<64x128xf32>
    %c0_12 = arith.constant 0 : index
    %c0_13 = arith.constant 0 : index
    %c0_14 = arith.constant 0 : index
    %31 = vector.load %arg9[%c0_12, %c0_13, %c0_14] : memref<1x64x128xf32, #tpu.memory_space<vmem>>, vector<1x64x128xf32>
    %32 = vector.shape_cast %31 : vector<1x64x128xf32> to vector<64x128xf32>
    %33 = vector.shape_cast %30 : vector<64x128xf32> to vector<1x64x128xf32>
    tpu.vector_store %arg9[%c0_12, %c0_13, %c0_14], %33 {strides = array<i32>} : memref<1x64x128xf32, #tpu.memory_space<vmem>>, vector<1x64x128xf32>,
    %34 = vector.extract_strided_slice %9 {offsets = [0, 256], sizes = [128, 256], strides = [1, 1]} : vector<128x512xf32> to vector<128x256xf32>
    %cst_15 = arith.constant dense<0xFF800000> : vector<128xf32>
    %35 = vector.multi_reduction <maximumf>, %34, %cst_15 [1] : vector<128x256xf32> to vector<128xf32>
    %36 = vector.shape_cast %35 : vector<128xf32> to vector<128x1xf32>
    %37 = vector.broadcast %36 : vector<128x1xf32> to vector<128x256xf32>
    %38 = arith.subf %34, %37 : vector<128x256xf32>
    %39 = math.exp %38 : vector<128x256xf32>
    %cst_16 = arith.constant dense<0.000000e+00> : vector<128xf32>
    %40 = vector.multi_reduction <add>, %39, %cst_16 [1] : vector<128x256xf32> to vector<128xf32>
    %41 = vector.shape_cast %40 : vector<128xf32> to vector<128x1xf32>
    %42 = tpu.reciprocal %41 {approx = true} : vector<128x1xf32> -> vector<128x1xf32>
    %43 = vector.broadcast %42 : vector<128x1xf32> to vector<128x256xf32>
    %44 = arith.mulf %39, %43 : vector<128x256xf32>
    %45 = arith.truncf %44 : vector<128x256xf32> to vector<128x256xbf16>
    %c1 = arith.constant 1 : index
    %c0_17 = arith.constant 0 : index
    %c0_18 = arith.constant 0 : index
    %46 = vector.load %arg11[%c1, %c0_17, %c0_18] : memref<2x64x256xbf16, #tpu.memory_space<vmem>>, vector<1x64x256xbf16>
    %47 = vector.shape_cast %46 : vector<1x64x256xbf16> to vector<64x256xbf16>
    %cst_19 = arith.constant dense<0.000000e+00> : vector<64x128xf32>
    %48 = tpu.matmul %47, %45, %cst_19 {dimension_numbers = #tpu.dot_dimension_numbers<[1], [1], [0], [0], [0, 0, 1, 0], [], []>} : vector<64x256xbf16>, vector<128x256xbf16>, vector<64x128xf32> -> vector<64x128xf32>
    %c0_20 = arith.constant 0 : index
    %c0_21 = arith.constant 0 : index
    %49 = arith.index_cast %1 : i32 to index
    %50 = vector.load %arg3[%c0_20, %c0_21, %49] : memref<1x64x256xf32, #tpu.memory_space<vmem>>, vector<1x64x128xf32>
    %51 = vector.shape_cast %50 : vector<1x64x128xf32> to vector<64x128xf32>
    %52 = vector.broadcast %5 : f32 to vector<64x128xf32>
    %53 = arith.mulf %52, %48 : vector<64x128xf32>
    %54 = arith.addf %53, %51 : vector<64x128xf32>
    %c0_22 = arith.constant 0 : index
    %c0_23 = arith.constant 0 : index
    %c0_24 = arith.constant 0 : index
    %55 = vector.load %arg10[%c0_22, %c0_23, %c0_24] : memref<1x64x128xf32, #tpu.memory_space<vmem>>, vector<1x64x128xf32>
    %56 = vector.shape_cast %55 : vector<1x64x128xf32> to vector<64x128xf32>
    %57 = vector.shape_cast %54 : vector<64x128xf32> to vector<1x64x128xf32>
    tpu.vector_store %arg10[%c0_22, %c0_23, %c0_24], %57 {strides = array<i32>} : memref<1x64x128xf32, #tpu.memory_space<vmem>>, vector<1x64x128xf32>,
    return
  }
  func.func @transform_0(%arg0: i32, %arg1: i32) -> (i32, i32, i32) {
    %c0_i32 = arith.constant 0 : i32
    %c0_i32_0 = arith.constant 0 : i32
    %c0_i32_1 = arith.constant 0 : i32
    return %arg0, %c0_i32, %c0_i32_0 : i32, i32, i32
  }
  func.func @transform_1(%arg0: i32, %arg1: i32) -> (i32, i32, i32) {
    %c0_i32 = arith.constant 0 : i32
    %c0_i32_0 = arith.constant 0 : i32
    %c0_i32_1 = arith.constant 0 : i32
    return %arg0, %c0_i32, %c0_i32_0 : i32, i32, i32
  }
  func.func @transform_2(%arg0: i32, %arg1: i32) -> (i32, i32) {
    %c0_i32 = arith.constant 0 : i32
    %c0_i32_0 = arith.constant 0 : i32
    %c0_i32_1 = arith.constant 0 : i32
    return %c0_i32, %c0_i32_0 : i32, i32
  }
  func.func @transform_3(%arg0: i32, %arg1: i32) -> (i32, i32) {
    %c0_i32 = arith.constant 0 : i32
    %c0_i32_0 = arith.constant 0 : i32
    %c0_i32_1 = arith.constant 0 : i32
    return %c0_i32, %c0_i32_0 : i32, i32
  }
  func.func @transform_4(%arg0: i32, %arg1: i32) -> (i32, i32) {
    %c0_i32 = arith.constant 0 : i32
    %c0_i32_0 = arith.constant 0 : i32
    %c0_i32_1 = arith.constant 0 : i32
    return %c0_i32, %c0_i32_0 : i32, i32
  }
  func.func @transform_5(%arg0: i32, %arg1: i32) -> (i32, i32) {
    %c0_i32 = arith.constant 0 : i32
    %c0_i32_0 = arith.constant 0 : i32
    %c0_i32_1 = arith.constant 0 : i32
    return %c0_i32, %c0_i32_0 : i32, i32
  }
  func.func @transform_6(%arg0: i32, %arg1: i32) -> i32 {
    %c0_i32 = arith.constant 0 : i32
    %c0_i32_0 = arith.constant 0 : i32
    return %c0_i32 : i32
  }
  func.func @transform_7(%arg0: i32, %arg1: i32) -> (i32, i32, i32) {
    %c0_i32 = arith.constant 0 : i32
    %c0_i32_0 = arith.constant 0 : i32
    return %arg0, %c0_i32, %arg1 : i32, i32, i32
  }
  func.func @transform_8(%arg0: i32, %arg1: i32) -> (i32, i32, i32) {
    %c0_i32 = arith.constant 0 : i32
    %c0_i32_0 = arith.constant 0 : i32
    return %arg0, %c0_i32, %arg1 : i32, i32, i32
  }
}

</mosaic_0001>

<bundles_post_ra>
// kernel: tpu_custom_call.1
= control target key start
LH: loop header
LB: loop body
LE: loop exit
PB: predicated region body
PF: predicated region fallthrough
CT: control target
= control target key end

     0   :  { %s4079_s0 = inlined_call_operand.vmem [shape: f32[2,64,256], index: 0, kind: input, shape index: {}]   ;;  %s4080_s1 = inlined_call_operand.hbm [shape: f32[2,64,256], index: 1, kind: input, shape index: {}]   ;;  %s4081_s2 = inlined_call_operand.vmem [shape: bf16[88,64], index: 2, kind: input, shape index: {}]   ;;  %s4082_s3 = inlined_call_operand.vmem [shape: f32[88,1], index: 3, kind: input, shape index: {}]   ;;  %s4083_s4 = inlined_call_operand.vmem [shape: bf16[88,64], index: 4, kind: input, shape index: {}]   ;;  %s4084_s5 = inlined_call_operand.vmem [shape: f32[88,1], index: 5, kind: input, shape index: {}]   ;;  %s4085_s6 = inlined_call_operand.<no memory space> [shape: f32[1], index: 6, kind: input, shape index: {}]   ;;  %s4086_s7 = inlined_call_operand.hbm [shape: f32[2,64,256], index: 7, kind: output, shape index: {0}]   ;;  %s4087_s8 = inlined_call_operand.hbm [shape: f32[2,64,256], index: 8, kind: output, shape index: {1}]  }
   0x1   :  { %4133 = sst [smem:[#allocation39_spill]] %s4079_s0 }
   0x2   :  { %4134 = sst [smem:[#allocation40_spill]] %s4080_s1 }
   0x3   :  { %4135 = sst [smem:[#allocation41_spill]] %s4081_s2 }
   0x4   :  { %4136 = sst [smem:[#allocation42_spill]] %s4086_s7 }
   0x5   :  { %4137 = sst [smem:[#allocation43_spill]] %s4087_s8 }
   0x6   :  { %14 = sst [smem:[#allocation5]] %s4085_s6 }
   0x7   :  { %15 = vsyncpa [#allocation7], 0 }
   0x8   :  { %17 = vsyncpa [#allocation7 + $0x1], 0 }
   0x9   :  { %18 = vsyncpa [#allocation8], 0 }
   0xa   :  { %20 = vsyncpa [#allocation8 + $0x1], 0 }
   0xb   :  { %21 = vsyncpa [#allocation11], 0 }
   0xc   :  { %23 = vsyncpa [#allocation11 + $0x1], 0  ;;  %s3014_s29 = smov 0   ;;  %s3016_s30 = smov 0  }
   0xd   :  { %s3018_s9 = smov 0   ;;  %s3020_s10 = smov 0  }
   0xe   :  { %s3022_s11 = smov 0   ;;  %s3024_s12 = smov 0  }
   0xf   :  { %s3026_s13 = smov 0   ;;  %s3028_s6 = smov 0  }
  0x10   :  { %s3030_s14 = smov 0   ;;  %s3032_s15 = smov 0  }
  0x11   :  { %s3034_s16 = smov 0  }
  0x12 LB: > { %4138 = sst [smem:[#allocation15_spill]] %s2946_s14  ;;  %s2301_s17 = sadd.s32 4294967295, %s2954_s16   ;;  %s2954_s16 = sphi %s3034_s16, %s29_s16   ;;  %s2950_s15 = sphi %s3032_s15, %s4235_s15   ;;  %s2946_s14 = sphi %s3030_s14, %s4234_s14   ;;  %s2942_s6 = sphi %s3028_s6, %s4233_s6   ;;  %s2938_s13 = sphi %s3026_s13, %s4232_s13   ;;  %s2934_s12 = sphi %s3024_s12, %s4241_s12   ;;  %s2930_s11 = sphi %s3022_s11, %s4240_s11   ;;  %s2926_s10 = sphi %s3020_s10, %s4239_s10   ;;  %s2922_s9 = sphi %s3018_s9, %s4238_s9   ;;  %s2918_s30 = sphi %s3016_s30, %s4237_s30   ;;  %s2914_s29 = sphi %s3014_s29, %s4236_s29  }
  0x13   : > { %4139 = sst [smem:[#allocation16_spill]] %s2950_s15  ;;  %s2302_s18 = sadd.s32 4294967294, %s2954_s16  }
  0x14   : > { %s38_s19 = sadd.s32 1, %s2946_s14  ;;  %s41_s20 = sadd.s32 1, %s2950_s15 }
  0x15   : > { %p39_p0 = scmp.ge.s32.totalorder %s38_s19, 2  ;;  %s74_s21 = sadd.s32 1, %s2934_s12 }
  0x16   : > { %p81_p1 = scmp.ne.s32.totalorder %s2934_s12, %s2930_s11  ;;  %p82_p2 = scmp.eq.s32.totalorder %s2954_s16, 0 }
  0x17   : > { %s4243_s19 = smov (%p39_p0, %s38_s19), 0  ;;  %s4245_s20 = smov (!%p39_p0, %s41_s20), %s2950_s15 }
  0x18   : > { %4140 = sst [smem:[#allocation17_spill]] %s4243_s19  ;;  %p3078_p3 = por %p82_p2, %p81_p1 }
  0x19   : > { %p87_p4 = scmp.ne.s32.totalorder %s2930_s11, %s2926_s10  ;;  %p43_p5 = scmp.ge.s32.totalorder %s4245_s20, 2 }
  0x1a   : > { %p88_p6 = scmp.eq.s32.totalorder %s2301_s17, 0  ;;  %s203_s23 = ssub.s32 %s2946_s14, %s4243_s19 }
  0x1b   : > { %s207_s24 = sadd.s32 1, %s2922_s9  ;;  %s4247_s20 = smov (%p43_p5, %s4245_s20), 0 }
  0x1c   : > { %4142 = sst [smem:[#allocation18_spill]] %s4247_s20  ;;  %p3088_p7 = por %p88_p6, %p87_p4 }
  0x1d   : > { %p217_p8 = scmp.ne.s32.totalorder %s2922_s9, %s2918_s30  ;;  %s71_s26 = ssub.s32 %s2950_s15, %s4247_s20 }
  0x1e   : > { %p218_p9 = scmp.eq.s32.totalorder %s2301_s17, 3  ;;  %p72_p10 = scmp.eq.s32.totalorder %s71_s26, 0 }
  0x1f   : > { %s204_s27 = sor.u32 %s203_s23, %s71_s26  ;;  %p223_p13 = scmp.ne.s32.totalorder %s2918_s30, %s2914_s29 }
  0x20   : > { %p205_p11 = scmp.eq.s32.totalorder %s204_s27, 0  ;;  %p3096_p12 = por %p218_p9, %p217_p8 }
  0x21   : > { %s3101_s10 = scalar_select %p72_p10, %s2934_s12, %s74_s21  }
  0x22   : > { %s4144_s28 = scalar_select %p3096_p12, 1, 0 }
  0x23   : > { %s3104_s19 = scalar_select %p205_p11, %s2922_s9, %s207_s24  }
  0x24   : > { %4145 = sst [smem:[#allocation19_spill]] %s4144_s28  ;;  %p224_p0 = scmp.eq.s32.totalorder %s2302_s18, 3 }
  0x25   : > { %p2451_p1 = scmp.lt.s32.totalorder %s2954_s16, 4  ;;  %s295_s17 = sand.u32 1, %s2934_s12  }
  0x26   : > { %p3109_p2 = por %p224_p0, %p223_p13  ;;  %s2305_s23 = sshll.u32 %s295_s17, 7 }
  0x27   : > { %s2410_s26 = sshll.u32 %s2950_s15, 11  ;;  %s4147_s1 = sld [smem:[#allocation40_spill]] }
  0x28   : > { %s299_s7 = scalar_lea.vmem [#allocation6], %s2305_s23  ;;  %p3120_p4 = pnand %p2451_p1, %p3078_p3 }
  0x29   : > { %s306_s28 = sshll.u32 %s299_s7, 4  ;;  %p2308_p5 = scmp.ge.s32.totalorder %s2954_s16, 1  ;;  %s307_s28 = int_to_ptr.vmem [resolvable:$true] %s306_s28 }
  0x2a   : > { %s296_s18 = scalar_lea.sflag [#allocation7], %s295_s17  ;;  %p2778_p6 = pneg %p3120_p4 }
  0x2b   : > { %s2789_s24 = scalar_lea.vmem %s307_s28, 2048  ;;  %s2956_s15 = smov [#allocation6]  }
  0x2c   : > { %p2790_p8 = scmp.ne.s32.totalorder %s307_s28, %s2789_s24  ;;  %s2794_s20 = sshll.u32 %s2956_s15, 4  ;;  %s2795_s20 = int_to_ptr.vmem [resolvable:$false] %s2794_s20 }
  0x2d   : > { %s305_s8 = scalar_lea.hbm %s4147_s1, %s2410_s26  ;;  %s2796_s23 = scalar_lea.vmem %s2795_s20, 4096 }
  0x2e   : > { %p2792_p9 = pnand %p2790_p8, %p2778_p6  ;;  %p2797_p11 = scmp.lt.s32.totalorder %s307_s28, %s2795_s20 }
  0x2f   : > { %p2798_p13 = scmp.lt.s32.totalorder %s2796_s23, %s2789_s24 }
  0x30   : > { %p2793_p10 = pneg %p2792_p9 }
  0x31   : > { %p2799_p0 = por %p2798_p13, %p2797_p11 }
  0x33   : > { %p2800_p3 = pnand %p2799_p0, %p2793_p10 }
  0x35   : > { %2803 = shalt.err (!%p2800_p3)
}
  0x36   : > { %s2957_s7 = smov 256   ;;  %s2958_s22 = smov 16  }
  0x37   : > { %2443 = dma.hbm_to_vmem [thread:$0]  (!%p3120_p4), %s305_s8, 2048, %s307_s28, %s296_s18, %s2957_s7, %s2957_s7, %s2958_s22  }
  0x38   : > { %p314_p1 = scmp.lt.s32.totalorder %s2954_s16, 5 }
  0x3a   : > { %p315_p6 = pnand %p2308_p5, %p314_p1 }
  0x3c   : > { %318 = sbr.rel (%p315_p6) target bundleno = 1357 (0x54d), region = 48 }
  0x41   : > { %s320_s15 = sand.u32 1, %s2930_s11  }
  0x42   : > { %s2309_s17 = sshll.u32 %s320_s15, 7  ;;  %s321_s26 = scalar_lea.sflag [#allocation7], %s320_s15 }
  0x43   : > { %s3133_s27 = scalar_lea.vmem [#allocation6], %s2309_s17 }
  0x44   : > { %2901 = dma.done.wait (%p3088_p7), %s321_s26, 2048  }
  0x45   : > { %2903 = vsyncadd (%p3088_p7), %s321_s26, 4294965248  ;;  %s3140_s8 = sand.u32 1, %s2918_s30   ;;  %p367_p4 = scmp.lt.s32.totalorder %s2942_s6, 1 }
  0x46   : > { %s2310_s28 = sshll.u32 %s3140_s8, 6  ;;  %s4149_s0 = sld [smem:[#allocation39_spill]] }
  0x47   : > { %s368_s18 = scalar_select %p367_p4, %s2942_s6, 1 }
  0x48   : > { %s3151_s22 = scalar_lea.vmem [#allocation9], %s2310_s28  ;;  %s3153_s25 = scalar_lea.vmem [#allocation10], %s2310_s28 }
  0x49   : > { %s2411_s24 = sshll.u32 %s368_s18, 7  ;;  %p2315_p7 = scmp.ne.s32.totalorder %s2938_s13, 0 }
  0x4a   : > { %s4150_s2 = sld [smem:[#allocation41_spill]] (!%p2315_p7) }
  0x4b   : > { %377 = sbr.rel (%p2315_p7) target bundleno = 340 (0x154), region = 56 }
  0x4c   : > { %s3149_s7 = scalar_lea.vmem %s4149_s0, %s2411_s24 }
  0x50   : > { %v391_v0 = vld [vmem:[%s3149_s7 + $0x68] sm:$0xff]  ;;  %v393_v1 = vld [vmem:[%s3149_s7 + $0x78] sm:$0xff]  ;;  %v390_v5 = vld [vmem:[%s3149_s7 + $0x60] sm:$0xff]  ;;  %v2959_v7 = vmov 0   ;;  %vm507_vm0 = vcmask 523264  }
  0x51   : > { %v709_v2 = vld [vmem:[%s3133_s27 + $0x68] sm:$0xff]  ;;  %v401_v3 = vpack.c.bf16 %v393_v1, %v391_v0  ;;  %v711_v4 = vld [vmem:[%s3133_s27 + $0x78] sm:$0xff]  ;;  %v392_v6 = vld [vmem:[%s3149_s7 + $0x70] sm:$0xff]  ;;  %558 = vmatprep.mubr.bf16.mxu0 %v2959_v7  ;;  %875 = vmatprep.mubr.bf16.mxu1 %v2959_v7 }
  0x52   : > { %v719_v8 = vpack.c.bf16 %v711_v4, %v709_v2  ;;  %v400_v9 = vpack.c.bf16 %v392_v6, %v390_v5  ;;  %v708_v10 = vld [vmem:[%s3133_s27 + $0x60] sm:$0xff]  ;;  %v710_v11 = vld [vmem:[%s3133_s27 + $0x70] sm:$0xff]  ;;  %v387_v12 = vld [vmem:[%s3149_s7 + $0x48] sm:$0xff]  ;;  %2549 = vset.pattern.permute.xlu1 %v2959_v7  ;;  %2548 = vset.pattern.permute.xlu0 %v2959_v7 }
  0x53   : > { %534 = vmatprep.subr.bf16.mxu0 %v401_v3  ;;  %v718_v13 = vpack.c.bf16 %v710_v11, %v708_v10  ;;  %v389_v14 = vld [vmem:[%s3149_s7 + $0x58] sm:$0xff]  ;;  %v707_v16 = vld [vmem:[%s3133_s27 + $0x58] sm:$0xff]  ;;  %v386_v19 = vld [vmem:[%s3149_s7 + $0x40] sm:$0xff] }
  0x54   : > { %v705_v15 = vld [vmem:[%s3133_s27 + $0x48] sm:$0xff]  ;;  %851 = vmatprep.subr.bf16.mxu1 %v719_v8  ;;  %535 = vmatpush1.bf16.msra.mxu0 %v400_v9  ;;  %v399_v17 = vpack.c.bf16 %v389_v14, %v387_v12  ;;  %v388_v20 = vld [vmem:[%s3149_s7 + $0x50] sm:$0xff]  ;;  %v706_v23 = vld [vmem:[%s3133_s27 + $0x50] sm:$0xff] }
  0x55   : > { %v717_v18 = vpack.c.bf16 %v707_v16, %v705_v15  ;;  %v704_v21 = vld [vmem:[%s3133_s27 + $0x40] sm:$0xff]  ;;  %852 = vmatpush1.bf16.msra.mxu1 %v718_v13  ;;  %v398_v22 = vpack.c.bf16 %v388_v20, %v386_v19  ;;  %v383_v24 = vld [vmem:[%s3149_s7 + $0x28] sm:$0xff]  ;;  %v385_v25 = vld [vmem:[%s3149_s7 + $0x38] sm:$0xff] }
  0x56   : > { %536 = vmatprep.subr.bf16.mxu0 %v399_v17  ;;  %v716_v26 = vpack.c.bf16 %v706_v23, %v704_v21  ;;  %v397_v27 = vpack.c.bf16 %v385_v25, %v383_v24  ;;  %v701_v28 = vld [vmem:[%s3133_s27 + $0x28] sm:$0xff]  ;;  %v703_v29 = vld [vmem:[%s3133_s27 + $0x38] sm:$0xff]  ;;  %v382_v30 = vld [vmem:[%s3149_s7 + $0x20] sm:$0xff] }
  0x57   : > { %853 = vmatprep.subr.bf16.mxu1 %v717_v18  ;;  %v715_v31 = vpack.c.bf16 %v703_v29, %v701_v28  ;;  %v384_v32 = vld [vmem:[%s3149_s7 + $0x30] sm:$0xff]  ;;  %v702_v34 = vld [vmem:[%s3133_s27 + $0x30] sm:$0xff]  ;;  %v379_v36 = vld [vmem:[%s3149_s7 + $0x8] sm:$0xff] }
  0x58   : > { %v700_v33 = vld [vmem:[%s3133_s27 + $0x20] sm:$0xff]  ;;  %537 = vmatpush1.bf16.msra.mxu0 %v398_v22  ;;  %v396_v35 = vpack.c.bf16 %v384_v32, %v382_v30  ;;  %v381_v37 = vld [vmem:[%s3149_s7 + $0x18] sm:$0xff]  ;;  %v699_v41 = vld [vmem:[%s3133_s27 + $0x18] sm:$0xff] }
  0x59   : > { %v697_v38 = vld [vmem:[%s3133_s27 + $0x8] sm:$0xff]  ;;  %854 = vmatpush1.bf16.msra.mxu1 %v716_v26  ;;  %538 = vmatprep.subr.bf16.mxu0 %v397_v27  ;;  %v714_v39 = vpack.c.bf16 %v702_v34, %v700_v33  ;;  %v395_v40 = vpack.c.bf16 %v381_v37, %v379_v36  ;;  %v378_v42 = vld [vmem:[%s3149_s7] sm:$0xff]  ;;  %v380_v43 = vld [vmem:[%s3149_s7 + $0x10] sm:$0xff] }
  0x5a   : > { %855 = vmatprep.subr.bf16.mxu1 %v715_v31  ;;  %v713_v44 = vpack.c.bf16 %v699_v41, %v697_v38  ;;  %v696_v45 = vld [vmem:[%s3133_s27] sm:$0xff]  ;;  %v698_v46 = vld [vmem:[%s3133_s27 + $0x10] sm:$0xff]  ;;  %v394_v47 = vpack.c.bf16 %v380_v43, %v378_v42  ;;  %v416_v53 = vld [vmem:[%s4082_s3 + $0x18] sm:$0xff] }
  0x5b   : > { %v712_v48 = vpack.c.bf16 %v698_v46, %v696_v45  ;;  %v2550_v49 = vld [vmem:[%s4150_s2] sm:$0xff]   ;;  %v415_v51 = vld [vmem:[%s4082_s3 + $0x10] sm:$0xff]  ;;  %v414_v54 = vld [vmem:[%s4082_s3 + $0x8] sm:$0xff] }
  0x5c   : > { %539 = vmatpush1.bf16.msra.mxu0 %v396_v35  ;;  %v2551_v50 = vld [vmem:[%s4083_s4] sm:$0xff]   ;;  %436 = vperm.xlu1 %2549, %v415_v51   ;;  %v2552_v55 = vld [vmem:[%s4150_s2 + $0x8] sm:$0xff]   ;;  %v420_v59 = vld [vmem:[%s4082_s3 + $0x38] sm:$0xff] }
  0x5d   : > { %856 = vmatpush1.bf16.msra.mxu1 %v714_v39  ;;  %540 = vmatprep.subr.bf16.mxu0 %v395_v40  ;;  %v413_v52 = vld [vmem:[%s4082_s3] sm:$0xff]  ;;  %v2553_v56 = vld [vmem:[%s4083_s4 + $0x8] sm:$0xff]   ;;  %v419_v60 = vld [vmem:[%s4082_s3 + $0x30] sm:$0xff] }
  0x5e   : > { %857 = vmatprep.subr.bf16.mxu1 %v713_v44  ;;  %426 = vperm.xlu0 %2548, %v413_v52   ;;  %v418_v57 = vld [vmem:[%s4082_s3 + $0x28] sm:$0xff]  ;;  %v417_v58 = vld [vmem:[%s4082_s3 + $0x20] sm:$0xff]  ;;  %v2554_v61 = vld [vmem:[%s4150_s2 + $0x10] sm:$0xff]  }
  0x5f   : > { %v2555_v62 = vld [vmem:[%s4083_s4 + $0x10] sm:$0xff]   ;;  %v422_v63 = vld [vmem:[%s4082_s3 + $0x48] sm:$0xff]  ;;  %v421_v0 = vld [vmem:[%s4082_s3 + $0x40] sm:$0xff] }
  0x60   : > { %541 = vmatpush1.bf16.msra.mxu0 %v394_v47  ;;  %441 = vperm.xlu1 %2549, %v416_v53   ;;  %v731_v1 = vld [vmem:[%s4084_s5] sm:$0xff]  ;;  %v423_v2 = vld [vmem:[%s4082_s3 + $0x50] sm:$0xff]  ;;  %v2556_v3 = vld [vmem:[%s4150_s2 + $0x18] sm:$0xff]  }
  0x61   : > { %858 = vmatpush1.bf16.msra.mxu1 %v712_v48  ;;  %v2557_v4 = vld [vmem:[%s4083_s4 + $0x18] sm:$0xff]   ;;  %v733_v5 = vld [vmem:[%s4084_s5 + $0x10] sm:$0xff]  ;;  %v732_v6 = vld [vmem:[%s4084_s5 + $0x8] sm:$0xff] }
  0x62   : > { %431 = vperm.xlu0 %2548, %v414_v54   ;;  %v735_v8 = vld [vmem:[%s4084_s5 + $0x20] sm:$0xff]  ;;  %v734_v9 = vld [vmem:[%s4084_s5 + $0x18] sm:$0xff]  ;;  %v737_v12 = vld [vmem:[%s4084_s5 + $0x30] sm:$0xff] }
  0x63   : > { %2322 = vmatmul.mubr.msk.bf16.vlgmr.msra.gmra.mxu0 %vm507_vm0, %v2550_v49  ;;  %v2558_v10 = vld [vmem:[%s4150_s2 + $0x20] sm:$0xff]   ;;  %v736_v13 = vld [vmem:[%s4084_s5 + $0x28] sm:$0xff]  ;;  %v738_v15 = vld [vmem:[%s4084_s5 + $0x38] sm:$0xff] }
  0x64   : > { %2345 = vmatmul.mubr.msk.bf16.vlgmr.msra.gmra.mxu1 %vm507_vm0, %v2551_v50  ;;  %568 = vmatprep.mubr.bf16.mxu0 %v2959_v7  ;;  %v2559_v11 = vld [vmem:[%s4083_s4 + $0x20] sm:$0xff]   ;;  %v2560_v16 = vld [vmem:[%s4150_s2 + $0x28] ss:$0 sps:$4 sm:$0xff]   ;;  %v741_v18 = vld [vmem:[%s4084_s5 + $0x50] sm:$0xff] }
  0x65   : > { %885 = vmatprep.mubr.bf16.mxu1 %v2959_v7  ;;  %451 = vperm.xlu1 %2549, %v418_v57   ;;  %v739_v14 = vld [vmem:[%s4084_s5 + $0x40] sm:$0xff]  ;;  %v2561_v17 = vld [vmem:[%s4083_s4 + $0x28] ss:$0 sps:$4 sm:$0xff]  }
  0x66   : > { %446 = vperm.xlu0 %2548, %v417_v58  }
  0x69   : > { %461 = vperm.xlu1 %2549, %v420_v59  }
  0x6a   : > { %456 = vperm.xlu0 %2548, %v419_v60  }
  0x6b   : > { %2323 = vmatmul.mubr.msk.bf16.gmra.mxu0 %vm507_vm0, %v2552_v55 }
  0x6c   : > { %2346 = vmatmul.mubr.msk.bf16.gmra.mxu1 %vm507_vm0, %v2553_v56  ;;  %578 = vmatprep.mubr.bf16.mxu0 %v2959_v7 }
  0x6d   : > { %895 = vmatprep.mubr.bf16.mxu1 %v2959_v7  ;;  %471 = vperm.xlu1 %2549, %v422_v63  }
  0x6e   : > { %466 = vperm.xlu0 %2548, %v421_v0  }
  0x71   : > { %744 = vperm.xlu1 %2549, %v731_v1  }
  0x72   : > { %476 = vperm.xlu0 %2548, %v423_v2  }
  0x73   : > { %2324 = vmatmul.mubr.msk.bf16.gmra.mxu0 %vm507_vm0, %v2554_v61 }
  0x74   : > { %2347 = vmatmul.mubr.msk.bf16.gmra.mxu1 %vm507_vm0, %v2555_v62  ;;  %588 = vmatprep.mubr.bf16.mxu0 %v2959_v7 }
  0x75   : > { %905 = vmatprep.mubr.bf16.mxu1 %v2959_v7  ;;  %754 = vperm.xlu1 %2549, %v733_v5  }
  0x76   : > { %749 = vperm.xlu0 %2548, %v732_v6  }
  0x79   : > { %764 = vperm.xlu1 %2549, %v735_v8  }
  0x7a   : > { %759 = vperm.xlu0 %2548, %v734_v9  }
  0x7b   : > { %2325 = vmatmul.mubr.msk.bf16.gmra.mxu0 %vm507_vm0, %v2556_v3 }
  0x7c   : > { %2348 = vmatmul.mubr.msk.bf16.gmra.mxu1 %vm507_vm0, %v2557_v4  ;;  %598 = vmatprep.mubr.bf16.mxu0 %v2959_v7 }
  0x7d   : > { %915 = vmatprep.mubr.bf16.mxu1 %v2959_v7  ;;  %774 = vperm.xlu1 %2549, %v737_v12  }
  0x7e   : > { %769 = vperm.xlu0 %2548, %v736_v13  }
  0x81   : > { %784 = vperm.xlu1 %2549, %v739_v14  }
  0x82   : > { %779 = vperm.xlu0 %2548, %v738_v15  }
  0x83   : > { %2326 = vmatmul.mubr.msk.bf16.gmra.mxu0 %vm507_vm0, %v2558_v10 }
  0x84   : > { %2349 = vmatmul.mubr.msk.bf16.gmra.mxu1 %vm507_vm0, %v2559_v11  ;;  %608 = vmatprep.mubr.bf16.mxu0 %v2959_v7 }
  0x85   : > { %925 = vmatprep.mubr.bf16.mxu1 %v2959_v7  ;;  %v740_v7 = vld [vmem:[%s4084_s5 + $0x48] sm:$0xff]  ;;  %794 = vperm.xlu1 %2549, %v741_v18  }
  0x86   : > { %789 = vperm.xlu0 %2548, %v740_v7  }
  0x8b   : > { %2327 = vmatmul.mubr.msk.bf16.gmra.mxu0 %vm507_vm0, %v2560_v16 }
  0x8c   : > { %2350 = vmatmul.mubr.msk.bf16.gmra.mxu1 %vm507_vm0, %v2561_v17 }
  0xd7   : > { %v437_v20 = vpop.permute.xlu1 %436 }
  0xd9   : > { %v427_v19 = vpop.permute.xlu0 %426 }
  0xdb   : > { %v442_v22 = vpop.permute.xlu1 %441 }
  0xdd   : > { %v432_v21 = vpop.permute.xlu0 %431 }
  0xe0   : > { %v3318_v24 = vpop.permute.xlu1 %451 }
  0xe1   : > { %v3316_v23 = vpop.permute.xlu0 %446 }
  0xe4   : > { %v3322_v26 = vpop.permute.xlu1 %461 }
  0xe5   : > { %v3320_v25 = vpop.permute.xlu0 %456 }
  0xe8   : > { %v3326_v28 = vpop.permute.xlu1 %471 }
  0xe9   : > { %v3324_v27 = vpop.permute.xlu0 %466 }
  0xec   : > { %v745_v33 = vpop.permute.xlu1 %744 }
  0xed   : > { %v3328_v30 = vpop.permute.xlu0 %476 }
  0xf0   : > { %v755_v55 = vpop.permute.xlu1 %754 }
  0xf1   : > { %v750_v44 = vpop.permute.xlu0 %749 }
  0xf4   : > { %v765_v14 = vpop.permute.xlu1 %764 }
  0xf5   : > { %v760_v2 = vpop.permute.xlu0 %759 }
 0x123   : > { %v560_v29 = vpop.f32.mrf.mxu0 }
 0x124   : > { %v877_v31 = vpop.f32.mrf.mxu1  ;;  %v561_v34 = vadd.f32 %v560_v29, %v427_v19 }
 0x125   : > { %v562_v32 = vpop.f32.mrf.mxu0  ;;  %v878_v37 = vadd.f32 %v877_v31, %v745_v33  ;;  %v770_v31 = vpop.permute.xlu0 %769 }
 0x126   : > { %v879_v35 = vpop.f32.mrf.mxu1  ;;  %v563_v36 = vadd.f32 %v562_v32, %v427_v19 }
 0x127   : > { %v880_v38 = vadd.f32 %v879_v35, %v745_v33  ;;  %v564_v39 = vpop.f32.mrf.mxu0 }
 0x128   : > { %v2412_v40 = vpack.c.bf16 %v563_v36, %v561_v34  ;;  %v881_v41 = vpop.f32.mrf.mxu1  ;;  %v565_v45 = vadd.f32 %v564_v39, %v432_v21 }
 0x129   : > { %v2423_v42 = vpack.c.bf16 %v880_v38, %v878_v37  ;;  %v566_v43 = vpop.f32.mrf.mxu0  ;;  %v882_v48 = vadd.f32 %v881_v41, %v750_v44  ;;  %v775_v41 = vpop.permute.xlu1 %774 }
 0x12a   : > { %669 = vst [vmem:[#allocation2 + $0x30] sm:$0xff] %v2412_v40  ;;  %v567_v46 = vadd.f32 %v566_v43, %v432_v21  ;;  %v883_v47 = vpop.f32.mrf.mxu1 }
 0x12b   : > { %987 = vst [vmem:[#allocation2 + $0x40] sm:$0xff] %v2423_v42  ;;  %v884_v49 = vadd.f32 %v883_v47, %v750_v44  ;;  %v570_v50 = vpop.f32.mrf.mxu0 }
 0x12c   : > { %v2413_v51 = vpack.c.bf16 %v567_v46, %v565_v45  ;;  %v887_v52 = vpop.f32.mrf.mxu1  ;;  %v571_v56 = vadd.f32 %v570_v50, %v437_v20 }
 0x12d   : > { %v2424_v53 = vpack.c.bf16 %v884_v49, %v882_v48  ;;  %v572_v54 = vpop.f32.mrf.mxu0  ;;  %v888_v59 = vadd.f32 %v887_v52, %v755_v55 }
 0x12e   : > { %670 = vst [vmem:[#allocation2] sm:$0xff] %v2413_v51  ;;  %v573_v57 = vadd.f32 %v572_v54, %v437_v20  ;;  %v889_v58 = vpop.f32.mrf.mxu1  ;;  %v780_v51 = vpop.permute.xlu0 %779 }
 0x12f   : > { %988 = vst [vmem:[#allocation2 + $0x20] sm:$0xff] %v2424_v53  ;;  %v890_v60 = vadd.f32 %v889_v58, %v755_v55  ;;  %v574_v61 = vpop.f32.mrf.mxu0 }
 0x130   : > { %v2414_v62 = vpack.c.bf16 %v573_v57, %v571_v56  ;;  %v891_v63 = vpop.f32.mrf.mxu1  ;;  %v575_v3 = vadd.f32 %v574_v61, %v442_v22  ;;  %v785_v61 = vpop.permute.xlu1 %784 }
 0x131   : > { %v2425_v0 = vpack.c.bf16 %v890_v60, %v888_v59  ;;  %v576_v1 = vpop.f32.mrf.mxu0  ;;  %v892_v6 = vadd.f32 %v891_v63, %v760_v2 }
 0x132   : > { %671 = vst [vmem:[#allocation2 + $0x58] sm:$0xff] %v2414_v62  ;;  %v577_v4 = vadd.f32 %v576_v1, %v442_v22  ;;  %v893_v5 = vpop.f32.mrf.mxu1 }
 0x133   : > { %989 = vst [vmem:[#allocation2 + $0x10] sm:$0xff] %v2425_v0  ;;  %v894_v8 = vadd.f32 %v893_v5, %v760_v2  ;;  %v580_v9 = vpop.f32.mrf.mxu0 }
 0x134   : > { %v2415_v10 = vpack.c.bf16 %v577_v4, %v575_v3  ;;  %v897_v11 = vpop.f32.mrf.mxu1  ;;  %v581_v15 = vadd.f32 %v580_v9, %v3316_v23 }
 0x135   : > { %v2426_v12 = vpack.c.bf16 %v894_v8, %v892_v6  ;;  %v582_v13 = vpop.f32.mrf.mxu0  ;;  %v898_v18 = vadd.f32 %v897_v11, %v765_v14  ;;  %v790_v8 = vpop.permute.xlu0 %789 }
 0x136   : > { %672 = vst [vmem:[#allocation2 + $0x18] sm:$0xff] %v2415_v10  ;;  %v583_v16 = vadd.f32 %v582_v13, %v3316_v23  ;;  %v899_v17 = vpop.f32.mrf.mxu1 }
 0x137   : > { %990 = vst [vmem:[#allocation2 + $0x38] sm:$0xff] %v2426_v12  ;;  %v900_v7 = vadd.f32 %v899_v17, %v765_v14  ;;  %v584_v19 = vpop.f32.mrf.mxu0 }
 0x138   : > { %v2416_v20 = vpack.c.bf16 %v583_v16, %v581_v15  ;;  %v901_v21 = vpop.f32.mrf.mxu1  ;;  %v585_v32 = vadd.f32 %v584_v19, %v3318_v24 }
 0x139   : > { %v2427_v22 = vpack.c.bf16 %v900_v7, %v898_v18  ;;  %v586_v29 = vpop.f32.mrf.mxu0  ;;  %v902_v35 = vadd.f32 %v901_v21, %v770_v31  ;;  %v795_v18 = vpop.permute.xlu1 %794 }
 0x13a   : > { %673 = vst [vmem:[#allocation2 + $0x50] sm:$0xff] %v2416_v20  ;;  %v587_v33 = vadd.f32 %v586_v29, %v3318_v24  ;;  %v903_v34 = vpop.f32.mrf.mxu1 }
 0x13b   : > { %991 = vst [vmem:[#allocation2 + $0x60] sm:$0xff] %v2427_v22  ;;  %v904_v36 = vadd.f32 %v903_v34, %v770_v31  ;;  %v590_v23 = vpop.f32.mrf.mxu0 }
 0x13c   : > { %v2417_v37 = vpack.c.bf16 %v587_v33, %v585_v32  ;;  %v907_v38 = vpop.f32.mrf.mxu1  ;;  %v591_v42 = vadd.f32 %v590_v23, %v3320_v25 }
 0x13d   : > { %v2428_v39 = vpack.c.bf16 %v904_v36, %v902_v35  ;;  %v592_v40 = vpop.f32.mrf.mxu0  ;;  %v908_v45 = vadd.f32 %v907_v38, %v775_v41 }
 0x13e   : > { %674 = vst [vmem:[#allocation2 + $0x68] sm:$0xff] %v2417_v37  ;;  %v593_v43 = vadd.f32 %v592_v40, %v3320_v25  ;;  %v909_v44 = vpop.f32.mrf.mxu1 }
 0x13f   : > { %992 = vst [vmem:[#allocation2 + $0x70] sm:$0xff] %v2428_v39  ;;  %v910_v46 = vadd.f32 %v909_v44, %v775_v41  ;;  %v594_v24 = vpop.f32.mrf.mxu0 }
 0x140   : > { %v2418_v47 = vpack.c.bf16 %v593_v43, %v591_v42  ;;  %v911_v48 = vpop.f32.mrf.mxu1  ;;  %v595_v52 = vadd.f32 %v594_v24, %v3322_v26 }
 0x141   : > { %v2429_v49 = vpack.c.bf16 %v910_v46, %v908_v45  ;;  %v596_v50 = vpop.f32.mrf.mxu0  ;;  %v912_v55 = vadd.f32 %v911_v48, %v780_v51 }
 0x142   : > { %675 = vst [vmem:[#allocation2 + $0x8] sm:$0xff] %v2418_v47  ;;  %v597_v53 = vadd.f32 %v596_v50, %v3322_v26  ;;  %v913_v54 = vpop.f32.mrf.mxu1 }
 0x143   : > { %993 = vst [vmem:[#allocation2 + $0x78] sm:$0xff] %v2429_v49  ;;  %v914_v56 = vadd.f32 %v913_v54, %v780_v51  ;;  %v600_v25 = vpop.f32.mrf.mxu0 }
 0x144   : > { %v2419_v57 = vpack.c.bf16 %v597_v53, %v595_v52  ;;  %v917_v58 = vpop.f32.mrf.mxu1  ;;  %v601_v62 = vadd.f32 %v600_v25, %v3324_v27 }
 0x145   : > { %v2430_v59 = vpack.c.bf16 %v914_v56, %v912_v55  ;;  %v602_v60 = vpop.f32.mrf.mxu0  ;;  %v918_v1 = vadd.f32 %v917_v58, %v785_v61 }
 0x146   : > { %676 = vst [vmem:[#allocation2 + $0x48] sm:$0xff] %v2419_v57  ;;  %v603_v63 = vadd.f32 %v602_v60, %v3324_v27  ;;  %v919_v0 = vpop.f32.mrf.mxu1 }
 0x147   : > { %994 = vst [vmem:[#allocation2 + $0x28] sm:$0xff] %v2430_v59  ;;  %v920_v2 = vadd.f32 %v919_v0, %v785_v61  ;;  %v604_v26 = vpop.f32.mrf.mxu0 }
 0x148   : > { %v2420_v3 = vpack.c.bf16 %v603_v63, %v601_v62  ;;  %v921_v4 = vpop.f32.mrf.mxu1  ;;  %v605_v9 = vadd.f32 %v604_v26, %v3326_v28 }
 0x149   : > { %v2431_v5 = vpack.c.bf16 %v920_v2, %v918_v1  ;;  %v606_v6 = vpop.f32.mrf.mxu0  ;;  %v922_v12 = vadd.f32 %v921_v4, %v790_v8 }
 0x14a   : > { %687 = vst [vmem:[#allocation3 + $0x10] sm:$0xff] %v2420_v3  ;;  %v607_v10 = vadd.f32 %v606_v6, %v3326_v28  ;;  %v923_v11 = vpop.f32.mrf.mxu1 }
 0x14b   : > { %1005 = vst [vmem:[#allocation3 + $0x8] sm:$0xff] %v2431_v5  ;;  %v924_v13 = vadd.f32 %v923_v11, %v790_v8  ;;  %v610_v27 = vpop.f32.mrf.mxu0 }
 0x14c   : > { %v2421_v14 = vpack.c.bf16 %v607_v10, %v605_v9  ;;  %v927_v15 = vpop.f32.mrf.mxu1  ;;  %v611_v7 = vadd.f32 %v610_v27, %v3328_v30 }
 0x14d   : > { %v2432_v16 = vpack.c.bf16 %v924_v13, %v922_v12  ;;  %v612_v17 = vpop.f32.mrf.mxu0  ;;  %v928_v21 = vadd.f32 %v927_v15, %v795_v18 }
 0x14e   : > { %688 = vst [vmem:[#allocation3] sm:$0xff] %v2421_v14  ;;  %v613_v19 = vadd.f32 %v612_v17, %v3328_v30  ;;  %v929_v20 = vpop.f32.mrf.mxu1 }
 0x14f   : > { %1006 = vst [vmem:[#allocation3 + $0x18] sm:$0xff] %v2432_v16  ;;  %v930_v22 = vadd.f32 %v929_v20, %v795_v18  ;;  %v614_v28 = vpop.f32.mrf.mxu0 }
 0x150   : > { %v2422_v29 = vpack.c.bf16 %v613_v19, %v611_v7  ;;  %v931_v31 = vpop.f32.mrf.mxu1 }
 0x151   : > { %v2433_v32 = vpack.c.bf16 %v930_v22, %v928_v21  ;;  %v615_v33 = vpop.f32.mrf.mxu0 }
 0x152   : > { %695 = vst [vmem:[#allocation4] sm:$0xff] %v2422_v29  ;;  %v932_v34 = vpop.f32.mrf.mxu1 }
 0x153   : > { %1013 = vst [vmem:[#allocation4 + $0x8] sm:$0xff] %v2433_v32 }
 0x154 PF: > { %s4151_s15 = sshll.u32 %s2938_s13, 7  ;;  %v2960_v36 = vmov 0   ;;  %vm1067_vm1 = vcmask 130048   ;;  %s1014_s0 = sld [smem:[#allocation5]] }
 0x155   : > { %s3346_s17 = sshra.s32 %s4151_s15, 7  ;;  %v2563_v35 = vld [vmem:[#allocation3 + $0x14] ss:$-16 sps:$4 sm:$0xff]   ;;  %1124 = vmatprep.mubr.bf16.mxu0 %v2960_v36  ;;  %1237 = vmatprep.mubr.bf16.mxu1 %v2960_v36  ;;  %v2567_v23 = vld [vmem:[#allocation3 + $0x10] ss:$-16 sps:$4 sm:$0xff]   ;;  %s4225_s15 = sld [smem:[#allocation42_spill]] }
 0x156   : > { %s2362_s26 = sshll.u32 %s3346_s17, 2  ;;  %v2565_v30 = vld [vmem:[#allocation3 + $0xc] ss:$16 sps:$4 sm:$0xff]   ;;  %1106 = vmatprep.subr.bf16.mxu0 %v2563_v35  ;;  %v2568_v37 = vld [vmem:[#allocation3 + $0x8] ss:$16 sps:$4 sm:$0xff]   ;;  %s2392_s21 = sshll.u32 %s3346_s17, 3 }
 0x157   : > { %s1018_s28 = scalar_lea.vmem [#allocation4], %s2362_s26  ;;  %1219 = vmatprep.subr.bf16.mxu1 %v2565_v30  ;;  %1107 = vmatpush1.bf16.msra.mxu0 %v2567_v23  ;;  %s3910_s18 = scalar_lea.vmem %s3149_s7, %s2392_s21 }
 0x158   : > { %1220 = vmatpush1.bf16.msra.mxu1 %v2568_v37  ;;  %s3916_s24 = scalar_lea.vmem %s3133_s27, %s2392_s21 [#allocation6]  ;;  %s2404_s27 = sshll.u32 %s2942_s6, 4 }
 0x159   : > { %s3950_s7 = sadd.s32 %s2938_s13, %s2404_s27  ;;  %s2146_s6 = sshll.u32 %s3151_s22, 4  ;;  %s3973_s6 = int_to_ptr.vmem [resolvable:$true] %s2146_s6 }
 0x15a   : > { %v2562_v38 = vld [vmem:[%s1018_s28] ss:$8 sps:$4 sm:$0xff]   ;;  %s4132_s13 = sshll.u32 %s3950_s7, 7  ;;  %s2127_s21 = scalar_lea.sflag [#allocation8], %s3140_s8 }
 0x15b   : > { %1031 = vxpose.xlu0.c.b16.start.end [1/1] (short) %v2562_v38, 128  ;;  %s4226_s17 = smov %s4225_s15  ;;  %s3971_s26 = scalar_lea.hbm %s4225_s15, %s4132_s13 }
 0x15c   : > { %s2961_s27 = smov [#allocation9]  }
 0x15d   : > { %s2808_s20 = sshll.u32 %s2961_s27, 4  ;;  %s2809_s20 = int_to_ptr.vmem [resolvable:$false] %s2808_s20 }
 0x15e   : > { %s2810_s23 = scalar_lea.vmem %s2809_s20, 2048  ;;  %p2811_p10 = scmp.lt.s32.totalorder %s3973_s6, %s2809_s20 }
 0x1bd   : > { %v1039_v39 = vpop.trf.xlu0 }
 0x1be   : > { %2368 = vmatmul.mubr.msk.bf16.vlgmr.msra.gmra.mxu0 %vm1067_vm1, %v1039_v39  ;;  %2376 = vmatmul.mubr.msk.bf16.vlgmr.msra.gmra.mxu1 %vm1067_vm1, %v1039_v39 }
 0x1bf   : > { %1134 = vmatprep.mubr.bf16.mxu0 %v2960_v36  ;;  %1247 = vmatprep.mubr.bf16.mxu1 %v2960_v36 }
 0x1c1   : > { %v1040_v40 = vpop.trf.xlu0 }
 0x1c5   : > { %v1041_v41 = vpop.trf.xlu0 }
 0x1c6   : > { %2369 = vmatmul.mubr.msk.bf16.gmra.mxu0 %vm1067_vm1, %v1040_v40  ;;  %2377 = vmatmul.mubr.msk.bf16.gmra.mxu1 %vm1067_vm1, %v1040_v40 }
 0x1c7   : > { %1144 = vmatprep.mubr.bf16.mxu0 %v2960_v36  ;;  %1257 = vmatprep.mubr.bf16.mxu1 %v2960_v36 }
 0x1c9   : > { %v1042_v42 = vpop.trf.xlu0 }
 0x1cd   : > { %v1043_v43 = vpop.trf.xlu0 }
 0x1ce   : > { %2370 = vmatmul.mubr.msk.bf16.gmra.mxu0 %vm1067_vm1, %v1041_v41  ;;  %2378 = vmatmul.mubr.msk.bf16.gmra.mxu1 %vm1067_vm1, %v1041_v41 }
 0x1cf   : > { %1154 = vmatprep.mubr.bf16.mxu0 %v2960_v36  ;;  %1267 = vmatprep.mubr.bf16.mxu1 %v2960_v36 }
 0x1d1   : > { %v1044_v44 = vpop.trf.xlu0 }
 0x1d5   : > { %v1045_v45 = vpop.trf.xlu0 }
 0x1d6   : > { %2371 = vmatmul.mubr.msk.bf16.gmra.mxu0 %vm1067_vm1, %v1042_v42  ;;  %2379 = vmatmul.mubr.msk.bf16.gmra.mxu1 %vm1067_vm1, %v1042_v42 }
 0x1d7   : > { %1164 = vmatprep.mubr.bf16.mxu0 %v2960_v36  ;;  %1277 = vmatprep.mubr.bf16.mxu1 %v2960_v36 }
 0x1d9   : > { %v1046_v46 = vpop.trf.xlu0 }
 0x1de   : > { %2372 = vmatmul.mubr.msk.bf16.gmra.mxu0 %vm1067_vm1, %v1043_v43  ;;  %2380 = vmatmul.mubr.msk.bf16.gmra.mxu1 %vm1067_vm1, %v1043_v43 }
 0x1df   : > { %1174 = vmatprep.mubr.bf16.mxu0 %v2960_v36  ;;  %1287 = vmatprep.mubr.bf16.mxu1 %v2960_v36 }
 0x1e6   : > { %2373 = vmatmul.mubr.msk.bf16.gmra.mxu0 %vm1067_vm1, %v1044_v44  ;;  %2381 = vmatmul.mubr.msk.bf16.gmra.mxu1 %vm1067_vm1, %v1044_v44 }
 0x1e7   : > { %1184 = vmatprep.mubr.bf16.mxu0 %v2960_v36  ;;  %1297 = vmatprep.mubr.bf16.mxu1 %v2960_v36 }
 0x1ee   : > { %2374 = vmatmul.mubr.msk.bf16.gmra.mxu0 %vm1067_vm1, %v1045_v45  ;;  %2382 = vmatmul.mubr.msk.bf16.gmra.mxu1 %vm1067_vm1, %v1045_v45 }
 0x1ef   : > { %1194 = vmatprep.mubr.bf16.mxu0 %v2960_v36  ;;  %1307 = vmatprep.mubr.bf16.mxu1 %v2960_v36 }
 0x1f6   : > { %2375 = vmatmul.mubr.msk.bf16.gmra.mxu0 %vm1067_vm1, %v1046_v46  ;;  %2383 = vmatmul.mubr.msk.bf16.gmra.mxu1 %vm1067_vm1, %v1046_v46 }
 0x27e   : > { %v3365_v24 = vpop.f32.mrf.mxu0  ;;  %v3367_v47 = vpop.f32.mrf.mxu1 }
 0x27f   : > { %4152 = vst [vmem:[#allocation20_spill] sm:$0xff] %v3365_v24  ;;  %4153 = vst [vmem:[#allocation21_spill] sm:$0xff] %v3367_v47 }
 0x280   : > { %v3369_v48 = vpop.f32.mrf.mxu0  ;;  %v3371_v49 = vpop.f32.mrf.mxu1 }
 0x281   : > { %4154 = vst [vmem:[#allocation22_spill] sm:$0xff] %v3369_v48  ;;  %4155 = vst [vmem:[#allocation23_spill] sm:$0xff] %v3371_v49 }
 0x282   : > { %v3373_v50 = vpop.f32.mrf.mxu0  ;;  %v3375_v51 = vpop.f32.mrf.mxu1 }
 0x283   : > { %4156 = vst [vmem:[#allocation24_spill] sm:$0xff] %v3373_v50  ;;  %4157 = vst [vmem:[#allocation25_spill] sm:$0xff] %v3375_v51 }
 0x284   : > { %v3377_v52 = vpop.f32.mrf.mxu0  ;;  %v3379_v53 = vpop.f32.mrf.mxu1 }
 0x285   : > { %4158 = vst [vmem:[#allocation26_spill] sm:$0xff] %v3377_v52  ;;  %4159 = vst [vmem:[#allocation27_spill] sm:$0xff] %v3379_v53 }
 0x286   : > { %v3381_v54 = vpop.f32.mrf.mxu0  ;;  %v3383_v55 = vpop.f32.mrf.mxu1 }
 0x287   : > { %4160 = vst [vmem:[#allocation28_spill] sm:$0xff] %v3381_v54  ;;  %4161 = vst [vmem:[#allocation29_spill] sm:$0xff] %v3383_v55 }
 0x288   : > { %v3385_v56 = vpop.f32.mrf.mxu0  ;;  %v3387_v25 = vpop.f32.mrf.mxu1 }
 0x289   : > { %4162 = vst [vmem:[#allocation30_spill] sm:$0xff] %v3385_v56  ;;  %4163 = vst [vmem:[#allocation31_spill] sm:$0xff] %v3387_v25 }
 0x28a   : > { %v3389_v57 = vpop.f32.mrf.mxu0  ;;  %v3391_v58 = vpop.f32.mrf.mxu1 }
 0x28c   : > { %v3393_v59 = vpop.f32.mrf.mxu0  ;;  %v3395_v60 = vpop.f32.mrf.mxu1 }
 0x28d   : > { %4164 = vst [vmem:[#allocation32_spill] sm:$0xff] %v3395_v60 }
 0x28e   : > { %v3397_v61 = vpop.f32.mrf.mxu0  ;;  %v3399_v62 = vpop.f32.mrf.mxu1 }
 0x290   : > { %v3401_v63 = vpop.f32.mrf.mxu0  ;;  %v3403_v0 = vpop.f32.mrf.mxu1 }
 0x292   : > { %v3405_v1 = vpop.f32.mrf.mxu0  ;;  %v3407_v2 = vpop.f32.mrf.mxu1 }
 0x294   : > { %v3409_v26 = vpop.f32.mrf.mxu0  ;;  %v3411_v3 = vpop.f32.mrf.mxu1 }
 0x296   : > { %v3413_v4 = vpop.f32.mrf.mxu0  ;;  %v3415_v5 = vpop.f32.mrf.mxu1 }
 0x298   : > { %v3417_v6 = vpop.f32.mrf.mxu0  ;;  %v3419_v8 = vpop.f32.mrf.mxu1 }
 0x29a   : > { %v3421_v9 = vpop.f32.mrf.mxu0  ;;  %v3423_v10 = vpop.f32.mrf.mxu1 }
 0x29c   : > { %v3425_v11 = vpop.f32.mrf.mxu0  ;;  %v3427_v12 = vpop.f32.mrf.mxu1 }
 0x29e   : > { %v3429_v13 = vpop.f32.mrf.mxu0  ;;  %v3431_v27 = vpop.f32.mrf.mxu1 }
 0x2a0   : > { %v3433_v14 = vpop.f32.mrf.mxu0  ;;  %v3435_v15 = vpop.f32.mrf.mxu1 }
 0x2a2   : > { %v3437_v16 = vpop.f32.mrf.mxu0  ;;  %v3439_v17 = vpop.f32.mrf.mxu1 }
 0x2a3   : > { %4165 = vst [vmem:[#allocation33_spill] sm:$0xff] %v3437_v16 }
 0x2a4   : > { %v3441_v18 = vpop.f32.mrf.mxu0  ;;  %v3443_v7 = vpop.f32.mrf.mxu1 }
 0x2a5   : > { %4166 = vst [vmem:[#allocation34_spill] sm:$0xff] %v3441_v18  ;;  %4167 = vst [vmem:[#allocation35_spill] sm:$0xff] %v3443_v7 }
 0x2a6   : > { %v3445_v19 = vpop.f32.mrf.mxu0  ;;  %v3447_v20 = vpop.f32.mrf.mxu1 }
 0x2a8   : > { %v3449_v21 = vpop.f32.mrf.mxu0  ;;  %v3451_v22 = vpop.f32.mrf.mxu1 }
 0x2aa   : > { %v3453_v28 = vpop.f32.mrf.mxu0  ;;  %v3455_v29 = vpop.f32.mrf.mxu1 }
 0x2ac   : > { %v3457_v31 = vpop.f32.mrf.mxu0  ;;  %v3459_v32 = vpop.f32.mrf.mxu1 }
 0x2ae   : > { %v3461_v33 = vpop.f32.mrf.mxu0  ;;  %v3463_v34 = vpop.f32.mrf.mxu1 }
 0x2b0   : > { %v3465_v35 = vpop.f32.mrf.mxu0  ;;  %v3467_v30 = vpop.f32.mrf.mxu1 }
 0x2b1   : > { %4168 = vst [vmem:[#allocation36_spill] sm:$0xff] %v3467_v30  ;;  %v1354_v36 = vmax.f32 %v3461_v33, %v3465_v35  ;;  %v1758_v43 = vmax.f32 %v3463_v34, %v3467_v30  ;;  %v1749_v30 = vmax.f32 %v3439_v17, %v3443_v7 }
 0x2b2   : > { %v3471_v23 = vpop.f32.mrf.mxu0  ;;  %v3473_v37 = vpop.f32.mrf.mxu1 }
 0x2b3   : > { %4169 = vst [vmem:[#allocation37_spill] sm:$0xff] %v3471_v23  ;;  %1355 = vmax.xlane.f32.xlu1 %v1354_v36  ;;  %v1345_v36 = vmax.f32 %v3437_v16, %v3441_v18  ;;  %v1339_v18 = vmax.f32 %v3421_v9, %v3425_v11 }
 0x2b4   : > { %v3475_v38 = vpop.f32.mrf.mxu0  ;;  %v3481_v41 = vpop.f32.mrf.mxu1 }
 0x2b5   : > { %4170 = vst [vmem:[#allocation38_spill] sm:$0xff] %v3475_v38  ;;  %v1357_v39 = vmax.f32 %v3471_v23, %v3475_v38  ;;  %v1761_v46 = vmax.f32 %v3473_v37, %v3481_v41 }
 0x2b6   : > { %v3479_v40 = vpop.f32.mrf.mxu0  ;;  %v3489_v45 = vpop.f32.mrf.mxu1 }
 0x2b7   : > { %1358 = vmax.xlane.f32.xlu1 %v1357_v39 }
 0x2b8   : > { %v3483_v42 = vpop.f32.mrf.mxu0  ;;  %v3495_v39 = vpop.f32.mrf.mxu1 }
 0x2b9   : > { %v1360_v44 = vmax.f32 %v3479_v40, %v3483_v42  ;;  %v1764_v23 = vmax.f32 %v3489_v45, %v3495_v39 }
 0x2ba   : > { %v3497_v38 = vpop.f32.mrf.mxu0 }
 0x2bb   : > { %1759 = vmax.xlane.f32.xlu1 %v1758_v43  ;;  %1361 = vmax.xlane.f32.xlu0 %v1360_v44  ;;  %v3503_v43 = vpop.f32.mrf.mxu1 }
 0x2bc   : > { %v3505_v44 = vpop.f32.mrf.mxu0 }
 0x2bd   : > { %v1363_v16 = vmax.f32 %v3497_v38, %v3505_v44 }
 0x2bf   : > { %1762 = vmax.xlane.f32.xlu1 %v1761_v46  ;;  %1346 = vmax.xlane.f32.xlu0 %v1345_v36  ;;  %v3511_v46 = vpop.f32.mrf.mxu1  ;;  %v1743_v36 = vmax.f32 %v3423_v10, %v3427_v12 }
 0x2c0   : > { %v1767_v7 = vmax.f32 %v3503_v43, %v3511_v46 }
 0x2c3   : > { %1765 = vmax.xlane.f32.xlu1 %v1764_v23  ;;  %1750 = vmax.xlane.f32.xlu0 %v1749_v30  ;;  %v1333_v30 = vmax.f32 %v3405_v1, %v3409_v26  ;;  %v1348_v23 = vmax.f32 %v3445_v19, %v3449_v21 }
 0x2c7   : > { %1340 = vmax.xlane.f32.xlu0 %v1339_v18  ;;  %1364 = vmax.xlane.f32.xlu1 %v1363_v16  ;;  %v1737_v18 = vmax.f32 %v3407_v2, %v3411_v3  ;;  %v1351_v16 = vmax.f32 %v3453_v28, %v3457_v31 }
 0x2cb   : > { %1744 = vmax.xlane.f32.xlu0 %v1743_v36  ;;  %1768 = vmax.xlane.f32.xlu1 %v1767_v7  ;;  %v1327_v36 = vmax.f32 %v3389_v57, %v3393_v59  ;;  %v1752_v7 = vmax.f32 %v3447_v20, %v3451_v22 }
 0x2cf   : > { %1334 = vmax.xlane.f32.xlu0 %v1333_v30  ;;  %1349 = vmax.xlane.f32.xlu1 %v1348_v23  ;;  %v1731_v30 = vmax.f32 %v3391_v58, %v3395_v60  ;;  %v1755_v23 = vmax.f32 %v3455_v29, %v3459_v32 }
 0x2d3   : > { %1738 = vmax.xlane.f32.xlu0 %v1737_v18  ;;  %1352 = vmax.xlane.f32.xlu1 %v1351_v16  ;;  %v1321_v18 = vmax.f32 %v3373_v50, %v3377_v52  ;;  %v1342_v16 = vmax.f32 %v3429_v13, %v3433_v14 }
 0x2d7   : > { %1328 = vmax.xlane.f32.xlu0 %v1327_v36  ;;  %1753 = vmax.xlane.f32.xlu1 %v1752_v7  ;;  %v1725_v36 = vmax.f32 %v3375_v51, %v3379_v53  ;;  %v1746_v7 = vmax.f32 %v3431_v27, %v3435_v15 }
 0x2db   : > { %1732 = vmax.xlane.f32.xlu0 %v1731_v30  ;;  %1756 = vmax.xlane.f32.xlu1 %v1755_v23  ;;  %v1336_v30 = vmax.f32 %v3413_v4, %v3417_v6  ;;  %v1740_v23 = vmax.f32 %v3415_v5, %v3419_v8 }
 0x2df   : > { %1322 = vmax.xlane.f32.xlu0 %v1321_v18  ;;  %1343 = vmax.xlane.f32.xlu1 %v1342_v16  ;;  %v1330_v18 = vmax.f32 %v3397_v61, %v3401_v63  ;;  %v1734_v16 = vmax.f32 %v3399_v62, %v3403_v0 }
 0x2e3   : > { %1726 = vmax.xlane.f32.xlu0 %v1725_v36  ;;  %1747 = vmax.xlane.f32.xlu1 %v1746_v7  ;;  %v1324_v36 = vmax.f32 %v3381_v54, %v3385_v56  ;;  %v1728_v7 = vmax.f32 %v3383_v55, %v3387_v25 }
 0x2e7   : > { %1337 = vmax.xlane.f32.xlu1 %v1336_v30  ;;  %v1318_v30 = vmax.f32 %v3365_v24, %v3369_v48  ;;  %v4171_v24 = vld [vmem:[#allocation36_spill] sm:$0xff] }
 0x2eb   : > { %1741 = vmax.xlane.f32.xlu1 %v1740_v23  ;;  %v1722_v23 = vmax.f32 %v3367_v47, %v3371_v49 }
 0x2ef   : > { %1331 = vmax.xlane.f32.xlu1 %v1330_v18 }
 0x2f3   : > { %1735 = vmax.xlane.f32.xlu1 %v1734_v16 }
 0x2f7   : > { %1325 = vmax.xlane.f32.xlu1 %v1324_v36 }
 0x2fb   : > { %1729 = vmax.xlane.f32.xlu1 %v1728_v7 }
 0x2ff   : > { %1319 = vmax.xlane.f32.xlu1 %v1318_v30 }
 0x303   : > { %1723 = vmax.xlane.f32.xlu1 %v1722_v23 }
 0x33c   : > { %v1356_v18 = vpop.xlane.xlu1 %1355 }
 0x33d   : > { %v1390_v7 = vsub.f32 %v3461_v33, %v1356_v18  ;;  %v1391_v30 = vsub.f32 %v3465_v35, %v1356_v18  ;;  %v4172_v33 = vld [vmem:[#allocation37_spill] sm:$0xff] }
 0x340   : > { %v1359_v53 = vpop.xlane.xlu1 %1358 }
 0x344   : > { %v1760_v51 = vpop.xlane.xlu1 %1759  ;;  %v1362_v16 = vpop.xlane.xlu0 %1361 }
 0x345   : > { %v1394_v52 = vsub.f32 %v3479_v40, %v1362_v16  ;;  %v1395_v36 = vsub.f32 %v3483_v42, %v1362_v16  ;;  %v1794_v23 = vsub.f32 %v3463_v34, %v1760_v51  ;;  %v1795_v40 = vsub.f32 %v4171_v24, %v1760_v51 }
 0x346   : > { %v1446_v42 = vmul.f32 1.442695, %v1390_v7 }
 0x347   : > { %v1454_v50 = vmul.f32 1.442695, %v1394_v52  ;;  %v1456_v56 = vmul.f32 1.442695, %v1395_v36  ;;  %v1448_v36 = vmul.f32 1.442695, %v1391_v30 }
 0x348   : > { %v1763_v25 = vpop.xlane.xlu1 %1762  ;;  %v1347_v55 = vpop.xlane.xlu0 %1346  ;;  %v1850_v60 = vmul.f32 1.442695, %v1794_v23  ;;  %v1852_v35 = vmul.f32 1.442695, %v1795_v40 }
 0x349   : > { %2584 = vpow2.f32 %v1454_v50  ;;  %v1392_v50 = vsub.f32 %v4172_v33, %v1359_v53  ;;  %v4175_v33 = vld [vmem:[#allocation34_spill] sm:$0xff] }
 0x34a   : > { %2586 = vpow2.f32 %v1456_v56 }
 0x34c   : > { %v1766_v48 = vpop.xlane.xlu1 %1765  ;;  %v3568_v24 = vpop.xlane.xlu0 %1750 }
 0x34d   : > { %v1798_v49 = vsub.f32 %v3489_v45, %v1766_v48  ;;  %v1799_v47 = vsub.f32 %v3495_v39, %v1766_v48  ;;  %v1450_v39 = vmul.f32 1.442695, %v1392_v50  ;;  %v1385_v50 = vsub.f32 %v4175_v33, %v1347_v55 }
 0x34f   : > { %v1858_v52 = vmul.f32 1.442695, %v1798_v49  ;;  %v1860_v16 = vmul.f32 1.442695, %v1799_v47  ;;  %v4173_v47 = vld [vmem:[#allocation38_spill] sm:$0xff] }
 0x350   : > { %v1365_v54 = vpop.xlane.xlu1 %1364  ;;  %v1393_v45 = vsub.f32 %v4173_v47, %v1359_v53 }
 0x351   : > { %2588 = vpow2.f32 %v1858_v52  ;;  %v1396_v56 = vsub.f32 %v3497_v38, %v1365_v54  ;;  %v1397_v34 = vsub.f32 %v3505_v44, %v1365_v54  ;;  %v1796_v38 = vsub.f32 %v3473_v37, %v1763_v25  ;;  %v4174_v52 = vld [vmem:[#allocation33_spill] sm:$0xff] }
 0x352   : > { %2590 = vpow2.f32 %v1860_v16  ;;  %v1452_v53 = vmul.f32 1.442695, %v1393_v45  ;;  %v1384_v37 = vsub.f32 %v4174_v52, %v1347_v55  ;;  %v3581_v16 = vpop.xlane.xlu0 %1340 }
 0x353   : > { %2592 = vpow2.f32 %v1446_v42  ;;  %v1458_v48 = vmul.f32 1.442695, %v1396_v56  ;;  %v1460_v51 = vmul.f32 1.442695, %v1397_v34  ;;  %v1854_v42 = vmul.f32 1.442695, %v1796_v38 }
 0x354   : > { %2594 = vpow2.f32 %v1448_v36  ;;  %v1769_v49 = vpop.xlane.xlu1 %1768 }
 0x355   : > { %2596 = vpow2.f32 %v1850_v60  ;;  %v1800_v18 = vsub.f32 %v3503_v43, %v1769_v49  ;;  %v1801_v7 = vsub.f32 %v3511_v46, %v1769_v49  ;;  %v1797_v60 = vsub.f32 %v3481_v41, %v1763_v25 }
 0x356   : > { %2598 = vpow2.f32 %v1852_v35  ;;  %v3574_v44 = vpop.eup %2584  ;;  %v1788_v35 = vsub.f32 %v3439_v17, %v3568_v24  ;;  %v1436_v49 = vmul.f32 1.442695, %v1385_v50  ;;  %v3597_v45 = vpop.xlane.xlu0 %1744 }
 0x357   : > { %2600 = vpow2.f32 %v1458_v48  ;;  %v1862_v54 = vmul.f32 1.442695, %v1800_v18  ;;  %v1864_v30 = vmul.f32 1.442695, %v1801_v7  ;;  %v3576_v40 = vpop.eup %2586  ;;  %v1856_v41 = vmul.f32 1.442695, %v1797_v60 }
 0x358   : > { %2602 = vpow2.f32 %v1460_v51  ;;  %v1350_v23 = vpop.xlane.xlu1 %1349  ;;  %v1504_v36 = vadd.f32 %v3576_v40, %v3574_v44  ;;  %v1838_v17 = vmul.f32 1.442695, %v1788_v35 }
 0x359   : > { %2604 = vpow2.f32 %v1450_v39  ;;  %v1386_v43 = vsub.f32 %v3445_v19, %v1350_v23  ;;  %v1387_v46 = vsub.f32 %v3449_v21, %v1350_v23  ;;  %v1434_v21 = vmul.f32 1.442695, %v1384_v37 }
 0x35a   : > { %2606 = vpow2.f32 %v1862_v54  ;;  %1505 = vadd.xlane.f32.xlu1 %v1504_v36  ;;  %v4176_v54 = vld [vmem:[#allocation35_spill] sm:$0xff] }
 0x35b   : > { %v1438_v56 = vmul.f32 1.442695, %v1386_v43  ;;  %2608 = vpow2.f32 %v1864_v30  ;;  %v1440_v25 = vmul.f32 1.442695, %v1387_v46  ;;  %v1789_v30 = vsub.f32 %v4176_v54, %v3568_v24 }
 0x35c   : > { %v1353_v19 = vpop.xlane.xlu1 %1352  ;;  %2610 = vpow2.f32 %v1452_v53  ;;  %v1380_v24 = vsub.f32 %v3421_v9, %v3581_v16 }
 0x35d   : > { %v1388_v34 = vsub.f32 %v3453_v28, %v1353_v19  ;;  %2612 = vpow2.f32 %v1854_v42  ;;  %v1389_v51 = vsub.f32 %v3457_v31, %v1353_v19  ;;  %v1840_v50 = vmul.f32 1.442695, %v1789_v30 }
 0x35e   : > { %v3590_v48 = vpop.eup %2588  ;;  %2614 = vpow2.f32 %v1438_v56  ;;  %v3624_v56 = vpop.xlane.xlu0 %1334 }
 0x35f   : > { %v3593_v55 = vpop.eup %2590  ;;  %2616 = vpow2.f32 %v1440_v25  ;;  %v1442_v38 = vmul.f32 1.442695, %v1388_v34  ;;  %v1444_v23 = vmul.f32 1.442695, %v1389_v51  ;;  %v1426_v34 = vmul.f32 1.442695, %v1380_v24 }
 0x360   : > { %v3595_v47 = vpop.eup %2592  ;;  %v1754_v39 = vpop.xlane.xlu1 %1753  ;;  %v1908_v28 = vadd.f32 %v3593_v55, %v3590_v48  ;;  %2618 = vpow2.f32 %v1856_v41  ;;  %v1376_v24 = vsub.f32 %v3405_v1, %v3624_v56 }
 0x361   : > { %v3601_v18 = vpop.eup %2594  ;;  %v1790_v31 = vsub.f32 %v3447_v20, %v1754_v39  ;;  %2620 = vpow2.f32 %v1434_v21  ;;  %v1791_v53 = vsub.f32 %v3451_v22, %v1754_v39  ;;  %v1381_v22 = vsub.f32 %v3425_v11, %v3581_v16 }
 0x362   : > { %v3604_v7 = vpop.eup %2596  ;;  %1909 = vadd.xlane.f32.xlu1 %v1908_v28  ;;  %2622 = vpow2.f32 %v1436_v49  ;;  %v1498_v20 = vadd.f32 %v3601_v18, %v3595_v47 }
 0x363   : > { %v3609_v60 = vpop.eup %2598  ;;  %v1842_v43 = vmul.f32 1.442695, %v1790_v31  ;;  %2624 = vpow2.f32 %v1838_v17  ;;  %v1844_v52 = vmul.f32 1.442695, %v1791_v53  ;;  %v1428_v21 = vmul.f32 1.442695, %v1381_v22 }
 0x364   : > { %v3611_v42 = vpop.eup %2600  ;;  %v1757_v37 = vpop.xlane.xlu1 %1756  ;;  %2626 = vpow2.f32 %v1442_v38  ;;  %v1902_v16 = vadd.f32 %v3609_v60, %v3604_v7  ;;  %v1785_v17 = vsub.f32 %v3427_v12, %v3597_v45 }
 0x365   : > { %v3615_v46 = vpop.eup %2602  ;;  %v1792_v36 = vsub.f32 %v3455_v29, %v1757_v37  ;;  %2628 = vpow2.f32 %v1444_v23  ;;  %v1793_v35 = vsub.f32 %v3459_v32, %v1757_v37  ;;  %v1784_v32 = vsub.f32 %v3423_v10, %v3597_v45  ;;  %v3649_v10 = vpop.xlane.xlu0 %1738 }
 0x366   : > { %v3622_v33 = vpop.eup %2604  ;;  %1499 = vadd.xlane.f32.xlu1 %v1498_v20  ;;  %v1507_v25 = vadd.f32 %v3615_v46, %v3611_v42  ;;  %2630 = vpow2.f32 %v1842_v43  ;;  %v1832_v43 = vmul.f32 1.442695, %v1785_v17 }
 0x367   : > { %v1846_v9 = vmul.f32 1.442695, %v1792_v36  ;;  %v3629_v19 = vpop.eup %2606  ;;  %2632 = vpow2.f32 %v1844_v52  ;;  %v1848_v11 = vmul.f32 1.442695, %v1793_v35  ;;  %v1830_v12 = vmul.f32 1.442695, %v1784_v32 }
 0x368   : > { %1508 = vadd.xlane.f32.xlu0 %v1507_v25  ;;  %v1344_v29 = vpop.xlane.xlu1 %1343  ;;  %v3633_v41 = vpop.eup %2608  ;;  %2634 = vpow2.f32 %v1840_v50  ;;  %v1377_v36 = vsub.f32 %v3409_v26, %v3624_v56  ;;  %v1418_v56 = vmul.f32 1.442695, %v1376_v24 }
 0x369   : > { %v1382_v51 = vsub.f32 %v3429_v13, %v1344_v29  ;;  %v3638_v49 = vpop.eup %2610  ;;  %v1383_v39 = vsub.f32 %v3433_v14, %v1344_v29  ;;  %v1911_v28 = vadd.f32 %v3633_v41, %v3629_v19  ;;  %2636 = vpow2.f32 %v1846_v9 }
 0x36a   : > { %1903 = vadd.xlane.f32.xlu1 %v1902_v16  ;;  %v3645_v38 = vpop.eup %2612  ;;  %2638 = vpow2.f32 %v1848_v11  ;;  %v1501_v45 = vadd.f32 %v3638_v49, %v3622_v33  ;;  %v1329_v11 = vpop.xlane.xlu0 %1328  ;;  %v1420_v32 = vmul.f32 1.442695, %v1377_v36 }
 0x36b   : > { %v1430_v31 = vmul.f32 1.442695, %v1382_v51  ;;  %v3647_v54 = vpop.eup %2614  ;;  %v1432_v13 = vmul.f32 1.442695, %v1383_v39  ;;  %2640 = vpow2.f32 %v1426_v34  ;;  %v1373_v36 = vsub.f32 %v3393_v59, %v1329_v11 }
 0x36c   : > { %1912 = vadd.xlane.f32.xlu0 %v1911_v28  ;;  %v1748_v30 = vpop.xlane.xlu1 %1747  ;;  %v3651_v23 = vpop.eup %2616  ;;  %2642 = vpow2.f32 %v1428_v21 }
 0x36d   : > { %v1786_v14 = vsub.f32 %v3431_v27, %v1748_v30  ;;  %v3656_v53 = vpop.eup %2618  ;;  %v1787_v52 = vsub.f32 %v3435_v15, %v1748_v30  ;;  %v1492_v37 = vadd.f32 %v3651_v23, %v3647_v54  ;;  %2644 = vpow2.f32 %v1430_v31 }
 0x36e   : > { %v3661_v20 = vpop.eup %2620  ;;  %2646 = vpow2.f32 %v1432_v13  ;;  %v1905_v29 = vadd.f32 %v3656_v53, %v3645_v38 }
 0x36f   : > { %v1834_v22 = vmul.f32 1.442695, %v1786_v14  ;;  %v3665_v27 = vpop.eup %2622  ;;  %v1836_v50 = vmul.f32 1.442695, %v1787_v52  ;;  %1493 = vadd.xlane.f32.xlu1 %v1492_v37  ;;  %2648 = vpow2.f32 %v1830_v12 }
 0x370   : > { %1502 = vadd.xlane.f32.xlu0 %v1501_v45  ;;  %v1338_v15 = vpop.xlane.xlu1 %1337  ;;  %v3669_v35 = vpop.eup %2624  ;;  %2650 = vpow2.f32 %v1832_v43 }
 0x371   : > { %v1378_v25 = vsub.f32 %v3413_v4, %v1338_v15  ;;  %v1379_v9 = vsub.f32 %v3417_v6, %v1338_v15  ;;  %v3673_v1 = vpop.eup %2626  ;;  %2652 = vpow2.f32 %v1834_v22  ;;  %v1780_v4 = vsub.f32 %v3407_v2, %v3649_v10  ;;  %v1733_v45 = vpop.xlane.xlu0 %1732 }
 0x372   : > { %v3677_v26 = vpop.eup %2628  ;;  %2654 = vpow2.f32 %v1836_v50  ;;  %v1781_v2 = vsub.f32 %v3411_v3, %v3649_v10 }
 0x373   : > { %v1422_v16 = vmul.f32 1.442695, %v1378_v25  ;;  %v1424_v34 = vmul.f32 1.442695, %v1379_v9  ;;  %v3679_v21 = vpop.eup %2630  ;;  %v1495_v28 = vadd.f32 %v3677_v26, %v3673_v1 }
 0x374   : > { %1906 = vadd.xlane.f32.xlu0 %v1905_v29  ;;  %v1742_v6 = vpop.xlane.xlu1 %1741  ;;  %v3683_v51 = vpop.eup %2632 }
 0x375   : > { %2656 = vpow2.f32 %v1422_v16  ;;  %v1782_v17 = vsub.f32 %v3415_v5, %v1742_v6  ;;  %v1783_v39 = vsub.f32 %v3419_v8, %v1742_v6  ;;  %v1896_v31 = vadd.f32 %v3683_v51, %v3679_v21  ;;  %v3691_v13 = vpop.eup %2634  ;;  %v1323_v59 = vpop.xlane.xlu0 %1322 }
 0x376   : > { %2658 = vpow2.f32 %v1424_v34  ;;  %v3695_v14 = vpop.eup %2636  ;;  %v1822_v5 = vmul.f32 1.442695, %v1780_v4  ;;  %v1372_v8 = vsub.f32 %v3389_v57, %v1329_v11  ;;  %v1824_v57 = vmul.f32 1.442695, %v1781_v2 }
 0x377   : > { %2660 = vpow2.f32 %v1418_v56  ;;  %v1826_v30 = vmul.f32 1.442695, %v1782_v17  ;;  %v1828_v12 = vmul.f32 1.442695, %v1783_v39  ;;  %1897 = vadd.xlane.f32.xlu1 %v1896_v31  ;;  %v3698_v52 = vpop.eup %2638  ;;  %v1489_v11 = vadd.f32 %v3665_v27, %v3661_v20 }
 0x378   : > { %2662 = vpow2.f32 %v1420_v32  ;;  %1496 = vadd.xlane.f32.xlu0 %v1495_v28  ;;  %v1332_v43 = vpop.xlane.xlu1 %1331  ;;  %v3702_v3 = vpop.eup %2640  ;;  %v1899_v10 = vadd.f32 %v3698_v52, %v3695_v14  ;;  %v1410_v9 = vmul.f32 1.442695, %v1372_v8  ;;  %v1412_v4 = vmul.f32 1.442695, %v1373_v36 }
 0x379   : > { %2664 = vpow2.f32 %v1826_v30  ;;  %v1374_v37 = vsub.f32 %v3397_v61, %v1332_v43  ;;  %v1375_v24 = vsub.f32 %v3401_v63, %v1332_v43  ;;  %v3706_v22 = vpop.eup %2642  ;;  %v1776_v61 = vsub.f32 %v3391_v58, %v1733_v45  ;;  %v4178_v30 = vld [vmem:[#allocation28_spill] sm:$0xff] }
 0x37a   : > { %2666 = vpow2.f32 %v1828_v12  ;;  %v3709_v25 = vpop.eup %2644 }
 0x37b   : > { %v1414_v50 = vmul.f32 1.442695, %v1374_v37  ;;  %v1416_v15 = vmul.f32 1.442695, %v1375_v24  ;;  %2668 = vpow2.f32 %v1822_v5  ;;  %v3712_v29 = vpop.eup %2646  ;;  %v1814_v28 = vmul.f32 1.442695, %v1776_v61 }
 0x37c   : > { %1900 = vadd.xlane.f32.xlu0 %v1899_v10  ;;  %v1736_v63 = vpop.xlane.xlu1 %1735  ;;  %v3716_v34 = vpop.eup %2648  ;;  %v1486_v32 = vadd.f32 %v3712_v29, %v3709_v25  ;;  %v4179_v5 = vld [vmem:[#allocation30_spill] sm:$0xff]  ;;  %v1893_v37 = vadd.f32 %v3691_v13, %v3669_v35  ;;  %v4180_v10 = vld [vmem:[#allocation24_spill] sm:$0xff] }
 0x37d   : > { %2670 = vpow2.f32 %v1414_v50  ;;  %v1778_v56 = vsub.f32 %v3399_v62, %v1736_v63  ;;  %v1779_v16 = vsub.f32 %v3403_v0, %v1736_v63  ;;  %v3722_v58 = vpop.eup %2650  ;;  %v4177_v62 = vld [vmem:[#allocation32_spill] sm:$0xff]  ;;  %v4181_v61 = vld [vmem:[#allocation26_spill] sm:$0xff] }
 0x37e   : > { %2672 = vpow2.f32 %v1416_v15  ;;  %v3724_v39 = vpop.eup %2652  ;;  %v1777_v0 = vsub.f32 %v4177_v62, %v1733_v45  ;;  %1487 = vadd.xlane.f32.xlu1 %v1486_v32  ;;  %v1369_v63 = vsub.f32 %v4181_v61, %v1323_v59 }
 0x37f   : > { %2674 = vpow2.f32 %v1824_v57  ;;  %v1818_v6 = vmul.f32 1.442695, %v1778_v56  ;;  %v1820_v17 = vmul.f32 1.442695, %v1779_v16  ;;  %v3727_v2 = vpop.eup %2654  ;;  %v1368_v57 = vsub.f32 %v4180_v10, %v1323_v59  ;;  %v1727_v56 = vpop.xlane.xlu0 %1726 }
 0x380   : > { %2676 = vpow2.f32 %v1410_v9  ;;  %1490 = vadd.xlane.f32.xlu0 %v1489_v11  ;;  %v1326_v31 = vpop.xlane.xlu1 %1325  ;;  %v1890_v45 = vadd.f32 %v3727_v2, %v3724_v39  ;;  %v1816_v9 = vmul.f32 1.442695, %v1777_v0  ;;  %v1483_v59 = vadd.f32 %v3706_v22, %v3702_v3 }
 0x381   : > { %2678 = vpow2.f32 %v1818_v6  ;;  %v1370_v12 = vsub.f32 %v4178_v30, %v1326_v31  ;;  %v1371_v8 = vsub.f32 %v4179_v5, %v1326_v31  ;;  %v4184_v30 = vld [vmem:[#allocation25_spill] sm:$0xff] }
 0x382   : > { %v3731_v43 = vpop.eup %2656  ;;  %2680 = vpow2.f32 %v1820_v17  ;;  %1891 = vadd.xlane.f32.xlu1 %v1890_v45  ;;  %v4183_v17 = vld [vmem:[#allocation31_spill] sm:$0xff] }
 0x383   : > { %v3737_v24 = vpop.eup %2658  ;;  %2682 = vpow2.f32 %v1412_v4  ;;  %v1406_v36 = vmul.f32 1.442695, %v1370_v12  ;;  %v1408_v50 = vmul.f32 1.442695, %v1371_v8  ;;  %v4182_v4 = vld [vmem:[#allocation29_spill] sm:$0xff]  ;;  %v1772_v12 = vsub.f32 %v4184_v30, %v1727_v56  ;;  %v4185_v45 = vld [vmem:[#allocation27_spill] sm:$0xff] }
 0x384   : > { %v3740_v15 = vpop.eup %2660  ;;  %2684 = vpow2.f32 %v1814_v28  ;;  %1894 = vadd.xlane.f32.xlu0 %v1893_v37  ;;  %v1730_v16 = vpop.xlane.xlu1 %1729  ;;  %v1480_v11 = vadd.f32 %v3737_v24, %v3731_v43  ;;  %v1402_v28 = vmul.f32 1.442695, %v1368_v57  ;;  %v1404_v37 = vmul.f32 1.442695, %v1369_v63  ;;  %v4187_v57 = vld [vmem:[#allocation22_spill] sm:$0xff] }
 0x385   : > { %v3745_v32 = vpop.eup %2662  ;;  %2686 = vpow2.f32 %v1406_v36  ;;  %v1774_v6 = vsub.f32 %v4182_v4, %v1730_v16  ;;  %v1775_v62 = vsub.f32 %v4183_v17, %v1730_v16  ;;  %v1773_v10 = vsub.f32 %v4185_v45, %v1727_v56  ;;  %v4186_v16 = vld [vmem:[#allocation20_spill] sm:$0xff] }
 0x386   : > { %v3749_v31 = vpop.eup %2664  ;;  %2688 = vpow2.f32 %v1408_v50  ;;  %1481 = vadd.xlane.f32.xlu1 %v1480_v11  ;;  %v1806_v56 = vmul.f32 1.442695, %v1772_v12 }
 0x387   : > { %v3753_v0 = vpop.eup %2666  ;;  %v1810_v5 = vmul.f32 1.442695, %v1774_v6  ;;  %v1812_v8 = vmul.f32 1.442695, %v1775_v62  ;;  %2690 = vpow2.f32 %v1816_v9  ;;  %v1887_v9 = vadd.f32 %v3722_v58, %v3716_v34 }
 0x388   : > { %1484 = vadd.xlane.f32.xlu0 %v1483_v59  ;;  %v1320_v36 = vpop.xlane.xlu1 %1319  ;;  %v1884_v50 = vadd.f32 %v3753_v0, %v3749_v31  ;;  %v3759_v61 = vpop.eup %2668  ;;  %v1808_v59 = vmul.f32 1.442695, %v1773_v10 }
 0x389   : > { %2692 = vpow2.f32 %v1810_v5  ;;  %v1366_v4 = vsub.f32 %v4186_v16, %v1320_v36  ;;  %v1367_v17 = vsub.f32 %v4187_v57, %v1320_v36  ;;  %v4189_v36 = vld [vmem:[#allocation21_spill] sm:$0xff]  ;;  %v4190_v57 = vld [vmem:[#allocation23_spill] sm:$0xff] }
 0x38a   : > { %v3763_v30 = vpop.eup %2670  ;;  %2694 = vpow2.f32 %v1812_v8  ;;  %1885 = vadd.xlane.f32.xlu1 %v1884_v50 }
 0x38b   : > { %v3767_v63 = vpop.eup %2672  ;;  %2696 = vpow2.f32 %v1402_v28  ;;  %v1398_v11 = vmul.f32 1.442695, %v1366_v4  ;;  %v1400_v6 = vmul.f32 1.442695, %v1367_v17 }
 0x38c   : > { %v3769_v62 = vpop.eup %2674  ;;  %2698 = vpow2.f32 %v1404_v37  ;;  %1888 = vadd.xlane.f32.xlu0 %v1887_v9  ;;  %v1724_v5 = vpop.xlane.xlu1 %1723  ;;  %v1474_v45 = vadd.f32 %v3767_v63, %v3763_v30  ;;  %v1477_v37 = vadd.f32 %v3745_v32, %v3740_v15 }
 0x38d   : > { %v3773_v8 = vpop.eup %2676  ;;  %2700 = vpow2.f32 %v1398_v11  ;;  %v1770_v16 = vsub.f32 %v4189_v36, %v1724_v5  ;;  %v1771_v28 = vsub.f32 %v4190_v57, %v1724_v5  ;;  %v1881_v5 = vadd.f32 %v3769_v62, %v3759_v61 }
 0x38e   : > { %4188 = vst [vmem:[#allocation36_spill] sm:$0xff] %v3773_v8  ;;  %v3777_v12 = vpop.eup %2678  ;;  %2702 = vpow2.f32 %v1400_v6  ;;  %1475 = vadd.xlane.f32.xlu1 %v1474_v45 }
 0x38f   : > { %v3781_v10 = vpop.eup %2680  ;;  %2704 = vpow2.f32 %v1806_v56  ;;  %v1802_v50 = vmul.f32 1.442695, %v1770_v16  ;;  %v1804_v4 = vmul.f32 1.442695, %v1771_v28 }
 0x390   : > { %v3783_v17 = vpop.eup %2682  ;;  %2706 = vpow2.f32 %v1808_v59  ;;  %1478 = vadd.xlane.f32.xlu0 %v1477_v37  ;;  %v1878_v9 = vadd.f32 %v3781_v10, %v3777_v12 }
 0x391   : > { %v3787_v11 = vpop.eup %2684  ;;  %2708 = vpow2.f32 %v1802_v50  ;;  %v1471_v16 = vadd.f32 %v3783_v17, %v3773_v8 }
 0x392   : > { %4191 = vst [vmem:[#allocation37_spill] sm:$0xff] %v3787_v11  ;;  %v3789_v6 = vpop.eup %2686  ;;  %2710 = vpow2.f32 %v1804_v4  ;;  %1879 = vadd.xlane.f32.xlu1 %v1878_v9 }
 0x393   : > { %4192 = vst [vmem:[#allocation38_spill] sm:$0xff] %v3789_v6  ;;  %v3793_v56 = vpop.eup %2688 }
 0x394   : > { %4193 = vst [vmem:[#allocation33_spill] sm:$0xff] %v3793_v56  ;;  %1882 = vadd.xlane.f32.xlu0 %v1881_v5  ;;  %v1468_v59 = vadd.f32 %v3793_v56, %v3789_v6  ;;  %v3797_v45 = vpop.eup %2690 }
 0x395   : > { %4194 = vst [vmem:[#allocation34_spill] sm:$0xff] %v3797_v45  ;;  %v1875_v9 = vadd.f32 %v3797_v45, %v3787_v11 }
 0x396   : > { %v3799_v36 = vpop.eup %2692  ;;  %1469 = vadd.xlane.f32.xlu1 %v1468_v59 }
 0x397   : > { %4195 = vst [vmem:[#allocation35_spill] sm:$0xff] %v3799_v36  ;;  %v3803_v57 = vpop.eup %2694 }
 0x398   : > { %4196 = vst [vmem:[#allocation32_spill] sm:$0xff] %v3803_v57  ;;  %v3805_v28 = vpop.eup %2696  ;;  %1472 = vadd.xlane.f32.xlu0 %v1471_v16  ;;  %v1872_v37 = vadd.f32 %v3803_v57, %v3799_v36 }
 0x399   : > { %4197 = vst [vmem:[#allocation28_spill] sm:$0xff] %v3805_v28  ;;  %v3809_v50 = vpop.eup %2698 }
 0x39a   : > { %4198 = vst [vmem:[#allocation30_spill] sm:$0xff] %v3809_v50  ;;  %v3811_v4 = vpop.eup %2700  ;;  %1873 = vadd.xlane.f32.xlu1 %v1872_v37  ;;  %v1465_v36 = vadd.f32 %v3809_v50, %v3805_v28 }
 0x39b   : > { %4199 = vst [vmem:[#allocation24_spill] sm:$0xff] %v3811_v4  ;;  %v3815_v5 = vpop.eup %2702 }
 0x39c   : > { %4200 = vst [vmem:[#allocation26_spill] sm:$0xff] %v3815_v5  ;;  %v3817_v6 = vpop.eup %2704  ;;  %1876 = vadd.xlane.f32.xlu0 %v1875_v9  ;;  %v1462_v16 = vadd.f32 %v3815_v5, %v3811_v4  ;;  %v2571_v9 = vld [vmem:[#allocation2 + $0x34] ss:$-48 sps:$4 sm:$0xff]  }
 0x39d   : > { %4201 = vst [vmem:[#allocation29_spill] sm:$0xff] %v3817_v6  ;;  %v3821_v59 = vpop.eup %2706  ;;  %1654 = vmatprep.mubr.bf16.mxu0 %v2571_v9  ;;  %v3833_v4 = vld [vmem:[#allocation2 + $0x40] sm:$0xff] }
 0x39e   : > { %4202 = vst [vmem:[#allocation31_spill] sm:$0xff] %v3821_v59  ;;  %v3823_v56 = vpop.eup %2708  ;;  %1463 = vadd.xlane.f32.xlu1 %v1462_v16  ;;  %v1869_v37 = vadd.f32 %v3821_v59, %v3817_v6  ;;  %4205 = vst [vmem:[#allocation20_spill] sm:$0xff] %v3833_v4  ;;  %v3835_v5 = vld [vmem:[#allocation2 + $0x20] sm:$0xff] }
 0x39f   : > { %4203 = vst [vmem:[#allocation25_spill] sm:$0xff] %v3823_v56  ;;  %v3827_v57 = vpop.eup %2710  ;;  %4206 = vst [vmem:[#allocation22_spill] sm:$0xff] %v3835_v5 }
 0x3a0   : > { %4204 = vst [vmem:[#allocation27_spill] sm:$0xff] %v3827_v57  ;;  %1466 = vadd.xlane.f32.xlu0 %v1465_v36  ;;  %v1866_v11 = vadd.f32 %v3827_v57, %v3823_v56  ;;  %v2394_v36 = vcombine.high %v3833_v4, %v3835_v5 }
 0x3a2   : > { %1867 = vadd.xlane.f32.xlu1 %v1866_v11  ;;  %2059 = vmatprep.mubr.bf16.mxu1 %v2394_v36 }
 0x3a4   : > { %1870 = vadd.xlane.f32.xlu0 %v1869_v37 }
 0x3e3   : > { %v1506_v16 = vpop.xlane.xlu1 %1505 }
 0x3e4   : > { %2712 = vrcp.f32 %v1506_v16 }
 0x3eb   : > { %v1910_v56 = vpop.xlane.xlu1 %1909 }
 0x3ef   : > { %v1500_v6 = vpop.xlane.xlu1 %1499 }
 0x3f1   : > { %v1509_v57 = vpop.xlane.xlu0 %1508  ;;  %v2713_v59 = vpop.eup %2712 }
 0x3f2   : > { %2714 = vrcp.f32 %v1509_v57  ;;  %v1555_v36 = vmul.f32 %v2713_v59, %v3576_v40 }
 0x3f3   : > { %2716 = vrcp.f32 %v1910_v56  ;;  %v1904_v37 = vpop.xlane.xlu1 %1903  ;;  %v1554_v56 = vmul.f32 %v2713_v59, %v3574_v44 }
 0x3f5   : > { %v1913_v11 = vpop.xlane.xlu0 %1912 }
 0x3f6   : > { %2718 = vrcp.f32 %v1913_v11 }
 0x3f7   : > { %2720 = vrcp.f32 %v1500_v6 }
 0x3f8   : > { %v1494_v28 = vpop.xlane.xlu1 %1493 }
 0x3f9   : > { %v1503_v9 = vpop.xlane.xlu0 %1502 }
 0x3fa   : > { %2722 = vrcp.f32 %v1503_v9 }
 0x3fb   : > { %2724 = vrcp.f32 %v1904_v37 }
 0x3fd   : > { %v1907_v50 = vpop.xlane.xlu0 %1906 }
 0x3fe   : > { %2726 = vrcp.f32 %v1907_v50 }
 0x3ff   : > { %v2715_v5 = vpop.eup %2714  ;;  %2728 = vrcp.f32 %v1494_v28 }
 0x400   : > { %v2717_v4 = vpop.eup %2716  ;;  %v1557_v16 = vmul.f32 %v2715_v5, %v3615_v46  ;;  %v1556_v57 = vmul.f32 %v2715_v5, %v3611_v42  ;;  %v1898_v6 = vpop.xlane.xlu1 %1897 }
 0x401   : > { %v1497_v11 = vpop.xlane.xlu0 %1496  ;;  %v1959_v8 = vmul.f32 %v2717_v4, %v3593_v55  ;;  %v1958_v28 = vmul.f32 %v2717_v4, %v3590_v48 }
 0x402   : > { %2730 = vrcp.f32 %v1497_v11  ;;  %v1573_v9 = vpack.c.bf16 %v1557_v16, %v1555_v36  ;;  %v1572_v45 = vpack.c.bf16 %v1556_v57, %v1554_v56 }
 0x403   : > { %v2719_v37 = vpop.eup %2718  ;;  %2732 = vrcp.f32 %v1898_v6 }
 0x404   : > { %1622 = vmatprep.subr.bf16.mxu0 %v1573_v9  ;;  %v1961_v40 = vmul.f32 %v2719_v37, %v3633_v41  ;;  %v1960_v46 = vmul.f32 %v2719_v37, %v3629_v19  ;;  %v2721_v50 = vpop.eup %2720 }
 0x405   : > { %v1901_v44 = vpop.xlane.xlu0 %1900  ;;  %1623 = vmatpush1.bf16.xpose.msra.mxu0 %v1572_v45  ;;  %v1551_v36 = vmul.f32 %v2721_v50, %v3601_v18  ;;  %v1550_v16 = vmul.f32 %v2721_v50, %v3595_v47 }
 0x406   : > { %2734 = vrcp.f32 %v1901_v44  ;;  %v1977_v42 = vpack.c.bf16 %v1961_v40, %v1959_v8  ;;  %v1976_v5 = vpack.c.bf16 %v1960_v46, %v1958_v28 }
 0x407   : > { %v2723_v59 = vpop.eup %2722  ;;  %v1488_v19 = vpop.xlane.xlu1 %1487 }
 0x408   : > { %2027 = vmatprep.subr.bf16.mxu1 %v1977_v42  ;;  %v1553_v55 = vmul.f32 %v2723_v59, %v3638_v49  ;;  %v1552_v41 = vmul.f32 %v2723_v59, %v3622_v33  ;;  %v2725_v56 = vpop.eup %2724 }
 0x409   : > { %v1491_v48 = vpop.xlane.xlu0 %1490  ;;  %2028 = vmatpush1.bf16.xpose.msra.mxu1 %v1976_v5  ;;  %v1955_v8 = vmul.f32 %v2725_v56, %v3609_v60  ;;  %v1954_v49 = vmul.f32 %v2725_v56, %v3604_v7 }
 0x40a   : > { %2736 = vrcp.f32 %v1491_v48  ;;  %v1571_v4 = vpack.c.bf16 %v1553_v55, %v1551_v36  ;;  %v1570_v45 = vpack.c.bf16 %v1552_v41, %v1550_v16 }
 0x40b   : > { %v2727_v57 = vpop.eup %2726  ;;  %2738 = vrcp.f32 %v1488_v19  ;;  %v1892_v6 = vpop.xlane.xlu1 %1891 }
 0x40c   : > { %1624 = vmatprep.subr.bf16.mxu0 %v1571_v4  ;;  %v1957_v18 = vmul.f32 %v2727_v57, %v3656_v53  ;;  %v1956_v47 = vmul.f32 %v2727_v57, %v3645_v38  ;;  %v2729_v11 = vpop.eup %2728 }
 0x40d   : > { %v1895_v33 = vpop.xlane.xlu0 %1894  ;;  %1625 = vmatpush1.bf16.xpose.msra.mxu0 %v1570_v45  ;;  %v1547_v28 = vmul.f32 %v2729_v11, %v3651_v23  ;;  %v1546_v53 = vmul.f32 %v2729_v11, %v3647_v54 }
 0x40e   : > { %2740 = vrcp.f32 %v1895_v33  ;;  %v1975_v9 = vpack.c.bf16 %v1957_v18, %v1955_v8  ;;  %v1974_v37 = vpack.c.bf16 %v1956_v47, %v1954_v49 }
 0x40f   : > { %v2731_v40 = vpop.eup %2730  ;;  %2742 = vrcp.f32 %v1892_v6  ;;  %v1482_v50 = vpop.xlane.xlu1 %1481 }
 0x410   : > { %2029 = vmatprep.subr.bf16.mxu1 %v1975_v9  ;;  %v1549_v60 = vmul.f32 %v2731_v40, %v3677_v26  ;;  %v1548_v7 = vmul.f32 %v2731_v40, %v3673_v1  ;;  %v2733_v46 = vpop.eup %2732 }
 0x411   : > { %v1485_v38 = vpop.xlane.xlu0 %1484  ;;  %2030 = vmatpush1.bf16.xpose.msra.mxu1 %v1974_v37  ;;  %v1951_v59 = vmul.f32 %v2733_v46, %v3683_v51  ;;  %v1950_v26 = vmul.f32 %v2733_v46, %v3679_v21 }
 0x412   : > { %2744 = vrcp.f32 %v1485_v38  ;;  %v1569_v44 = vpack.c.bf16 %v1549_v60, %v1547_v28  ;;  %v1568_v42 = vpack.c.bf16 %v1548_v7, %v1546_v53 }
 0x413   : > { %v2735_v5 = vpop.eup %2734  ;;  %2746 = vrcp.f32 %v1482_v50  ;;  %v1886_v1 = vpop.xlane.xlu1 %1885 }
 0x414   : > { %1626 = vmatprep.subr.bf16.mxu0 %v1569_v44  ;;  %v1953_v23 = vmul.f32 %v2735_v5, %v3698_v52  ;;  %v1952_v54 = vmul.f32 %v2735_v5, %v3695_v14 }
 0x415   : > { %v1889_v36 = vpop.xlane.xlu0 %1888  ;;  %1627 = vmatpush1.bf16.xpose.msra.mxu0 %v1568_v42 }
 0x416   : > { %2748 = vrcp.f32 %v1889_v36  ;;  %v1973_v55 = vpack.c.bf16 %v1953_v23, %v1951_v59  ;;  %v1972_v16 = vpack.c.bf16 %v1952_v54, %v1950_v26 }
 0x417   : > { %v2737_v41 = vpop.eup %2736  ;;  %2750 = vrcp.f32 %v1886_v1  ;;  %v1476_v52 = vpop.xlane.xlu1 %1475 }
 0x418   : > { %v2739_v56 = vpop.eup %2738  ;;  %2031 = vmatprep.subr.bf16.mxu1 %v1973_v55  ;;  %v1545_v48 = vmul.f32 %v2737_v41, %v3665_v27  ;;  %v1544_v51 = vmul.f32 %v2737_v41, %v3661_v20 }
 0x419   : > { %v1479_v19 = vpop.xlane.xlu0 %1478  ;;  %2032 = vmatpush1.bf16.xpose.msra.mxu1 %v1972_v16  ;;  %v1543_v21 = vmul.f32 %v2739_v56, %v3712_v29  ;;  %v1542_v14 = vmul.f32 %v2739_v56, %v3709_v25 }
 0x41a   : > { %2752 = vrcp.f32 %v1479_v19  ;;  %v4207_v19 = vld [vmem:[#allocation36_spill] sm:$0xff] }
 0x41b   : > { %v2741_v4 = vpop.eup %2740  ;;  %2754 = vrcp.f32 %v1476_v52  ;;  %v1567_v45 = vpack.c.bf16 %v1545_v48, %v1543_v21  ;;  %v1566_v57 = vpack.c.bf16 %v1544_v51, %v1542_v14  ;;  %v1880_v20 = vpop.xlane.xlu1 %1879  ;;  %v4209_v21 = vld [vmem:[#allocation38_spill] sm:$0xff] }
 0x41c   : > { %v2743_v8 = vpop.eup %2742  ;;  %v1949_v18 = vmul.f32 %v2741_v4, %v3691_v13  ;;  %v1948_v49 = vmul.f32 %v2741_v4, %v3669_v35 }
 0x41d   : > { %1628 = vmatprep.subr.bf16.mxu0 %v1567_v45  ;;  %v1883_v27 = vpop.xlane.xlu0 %1882  ;;  %v1947_v47 = vmul.f32 %v2743_v8, %v3727_v2  ;;  %v1946_v11 = vmul.f32 %v2743_v8, %v3724_v39 }
 0x41e   : > { %2756 = vrcp.f32 %v1883_v27  ;;  %1629 = vmatpush1.bf16.xpose.msra.mxu0 %v1566_v57  ;;  %v4210_v57 = vld [vmem:[#allocation34_spill] sm:$0xff]  ;;  %v4212_v27 = vld [vmem:[#allocation32_spill] sm:$0xff] }
 0x41f   : > { %v2745_v25 = vpop.eup %2744  ;;  %2758 = vrcp.f32 %v1880_v20  ;;  %v1971_v29 = vpack.c.bf16 %v1949_v18, %v1947_v47  ;;  %v1970_v33 = vpack.c.bf16 %v1948_v49, %v1946_v11  ;;  %v1470_v37 = vpop.xlane.xlu1 %1469  ;;  %v4211_v18 = vld [vmem:[#allocation37_spill] sm:$0xff] }
 0x420   : > { %v2747_v6 = vpop.eup %2746  ;;  %v1541_v9 = vmul.f32 %v2745_v25, %v3706_v22  ;;  %v1540_v13 = vmul.f32 %v2745_v25, %v3702_v3 }
 0x421   : > { %2033 = vmatprep.subr.bf16.mxu1 %v1971_v29  ;;  %v1473_v35 = vpop.xlane.xlu0 %1472  ;;  %v1539_v40 = vmul.f32 %v2747_v6, %v3737_v24  ;;  %v1538_v2 = vmul.f32 %v2747_v6, %v3731_v43  ;;  %v4214_v6 = vld [vmem:[#allocation30_spill] sm:$0xff] }
 0x422   : > { %2760 = vrcp.f32 %v1473_v35  ;;  %2034 = vmatpush1.bf16.xpose.msra.mxu1 %v1970_v33 }
 0x423   : > { %v2749_v39 = vpop.eup %2748  ;;  %2762 = vrcp.f32 %v1470_v37  ;;  %v1565_v28 = vpack.c.bf16 %v1541_v9, %v1539_v40  ;;  %v1564_v60 = vpack.c.bf16 %v1540_v13, %v1538_v2  ;;  %v1874_v46 = vpop.xlane.xlu1 %1873  ;;  %v4215_v13 = vld [vmem:[#allocation28_spill] sm:$0xff]  ;;  %v4216_v37 = vld [vmem:[#allocation26_spill] sm:$0xff] }
 0x424   : > { %v2751_v53 = vpop.eup %2750  ;;  %v1945_v7 = vmul.f32 %v2749_v39, %v3722_v58  ;;  %v1944_v22 = vmul.f32 %v2749_v39, %v3716_v34  ;;  %v4217_v2 = vld [vmem:[#allocation24_spill] sm:$0xff] }
 0x425   : > { %1630 = vmatprep.subr.bf16.mxu0 %v1565_v28  ;;  %v1877_v3 = vpop.xlane.xlu0 %1876  ;;  %v1943_v38 = vmul.f32 %v2751_v53, %v3753_v0  ;;  %v1942_v24 = vmul.f32 %v2751_v53, %v3749_v31 }
 0x426   : > { %2764 = vrcp.f32 %v1877_v3  ;;  %1631 = vmatpush1.bf16.xpose.msra.mxu0 %v1564_v60 }
 0x427   : > { %v2753_v43 = vpop.eup %2752  ;;  %2766 = vrcp.f32 %v1874_v46  ;;  %v1969_v50 = vpack.c.bf16 %v1945_v7, %v1943_v38  ;;  %v1968_v44 = vpack.c.bf16 %v1944_v22, %v1942_v24  ;;  %v1464_v59 = vpop.xlane.xlu1 %1463  ;;  %v4218_v22 = vld [vmem:[#allocation31_spill] sm:$0xff]  ;;  %v4219_v46 = vld [vmem:[#allocation29_spill] sm:$0xff] }
 0x428   : > { %v2755_v42 = vpop.eup %2754  ;;  %v1537_v5 = vmul.f32 %v2753_v43, %v3745_v32  ;;  %v1536_v58 = vmul.f32 %v2753_v43, %v3740_v15  ;;  %v4220_v24 = vld [vmem:[#allocation27_spill] sm:$0xff] }
 0x429   : > { %2035 = vmatprep.subr.bf16.mxu1 %v1969_v50  ;;  %v1467_v34 = vpop.xlane.xlu0 %1466  ;;  %v1535_v23 = vmul.f32 %v2755_v42, %v3767_v63  ;;  %v1534_v0 = vmul.f32 %v2755_v42, %v3763_v30  ;;  %v4221_v50 = vld [vmem:[#allocation25_spill] sm:$0xff] }
 0x42a   : > { %2768 = vrcp.f32 %v1467_v34  ;;  %2036 = vmatpush1.bf16.xpose.msra.mxu1 %v1968_v44  ;;  %v1577_v34 = vld [vmem:[#allocation2 + $0x18] sm:$0xff] }
 0x42b   : > { %v2757_v31 = vpop.eup %2756  ;;  %2770 = vrcp.f32 %v1464_v59  ;;  %v1563_v26 = vpack.c.bf16 %v1537_v5, %v1535_v23  ;;  %v1562_v54 = vpack.c.bf16 %v1536_v58, %v1534_v0  ;;  %v1868_v55 = vpop.xlane.xlu1 %1867  ;;  %v1576_v58 = vld [vmem:[#allocation2 + $0x58] sm:$0xff]  ;;  %v2569_v59 = vld [vmem:[#allocation2 + $0x30] ss:$-48 sps:$4 sm:$0xff]  }
 0x42c   : > { %v2759_v36 = vpop.eup %2758  ;;  %v1941_v1 = vmul.f32 %v2757_v31, %v3769_v62  ;;  %v1940_v32 = vmul.f32 %v2757_v31, %v3759_v61  ;;  %v4208_v61 = vld [vmem:[#allocation33_spill] sm:$0xff]  ;;  %v2387_v23 = vcombine.high %v1576_v58, %v1577_v34  ;;  %v4222_v31 = vld [vmem:[#allocation20_spill] sm:$0xff] }
 0x42d   : > { %1632 = vmatprep.subr.bf16.mxu0 %v1563_v26  ;;  %v1871_v15 = vpop.xlane.xlu0 %1870  ;;  %v1939_v16 = vmul.f32 %v2759_v36, %v3781_v10  ;;  %v1938_v63 = vmul.f32 %v2759_v36, %v3777_v12  ;;  %v2572_v0 = vld [vmem:[#allocation2 + $0x14] ss:$40 sps:$4 sm:$0xff]   ;;  %v4223_v26 = vld [vmem:[#allocation22_spill] sm:$0xff]  ;;  %v2386_v36 = vcombine.low %v1576_v58, %v1577_v34 }
 0x42e   : > { %2772 = vrcp.f32 %v1871_v15  ;;  %1633 = vmatpush1.bf16.xpose.msra.mxu0 %v1562_v54  ;;  %v4224_v54 = vcombine.low %v4222_v31, %v4223_v26  ;;  %v2578_v15 = vld [vmem:[#allocation2 + $0x64] ss:$16 sps:$4 sm:$0xff]  }
 0x42f   : > { %v2761_v30 = vpop.eup %2760  ;;  %2774 = vrcp.f32 %v1868_v55  ;;  %v1967_v41 = vpack.c.bf16 %v1941_v1, %v1939_v16  ;;  %v1966_v56 = vpack.c.bf16 %v1940_v32, %v1938_v63  ;;  %v2575_v1 = vld [vmem:[#allocation2 + $0x54] ss:$24 sps:$4 sm:$0xff]   ;;  %v2574_v32 = vld [vmem:[#allocation2 + $0x10] ss:$40 sps:$4 sm:$0xff]   ;;  %v2098_v31 = vld [vmem:[%s3916_s24 + $0x40] sm:$0xff] }
 0x430   : > { %v2763_v48 = vpop.eup %2762  ;;  %v1533_v51 = vmul.f32 %v2761_v30, %v3783_v17  ;;  %v1532_v62 = vmul.f32 %v2761_v30, %v4207_v19  ;;  %v4213_v17 = vld [vmem:[#allocation35_spill] sm:$0xff]  ;;  %v3912_v19 = vstv %s1014_s0 }
 0x431   : > { %2037 = vmatprep.subr.bf16.mxu1 %v1967_v41  ;;  %v1531_v52 = vmul.f32 %v2763_v48, %v4208_v61  ;;  %v1530_v14 = vmul.f32 %v2763_v48, %v4209_v21  ;;  %v1580_v55 = vld [vmem:[#allocation2 + $0x8] sm:$0xff]  ;;  %v2580_v41 = vld [vmem:[#allocation2 + $0x60] ss:$16 sps:$4 sm:$0xff]  }
 0x432   : > { %2038 = vmatpush1.bf16.xpose.msra.mxu1 %v1966_v56  ;;  %v1581_v16 = vld [vmem:[#allocation2 + $0x48] sm:$0xff]  ;;  %v1689_v61 = vld [vmem:[%s3910_s18] sm:$0xff] }
 0x433   : > { %v2765_v10 = vpop.eup %2764  ;;  %v1561_v4 = vpack.c.bf16 %v1533_v51, %v1531_v52  ;;  %v1560_v12 = vpack.c.bf16 %v1532_v62, %v1530_v14  ;;  %v2577_v63 = vld [vmem:[#allocation2 + $0x50] ss:$24 sps:$4 sm:$0xff]   ;;  %v2391_v30 = vcombine.high %v1580_v55, %v1581_v16  ;;  %v2581_v56 = vld [vmem:[#allocation2 + $0x7c] ss:$-80 sps:$4 sm:$0xff]   ;;  %v2390_v48 = vcombine.low %v1580_v55, %v1581_v16  ;;  %v1695_v16 = vld [vmem:[%s3910_s18 + $0x60] sm:$0xff] }
 0x434   : > { %v2767_v45 = vpop.eup %2766  ;;  %v1937_v8 = vmul.f32 %v2765_v10, %v4210_v57  ;;  %v1936_v49 = vmul.f32 %v2765_v10, %v4211_v18  ;;  %v2583_v51 = vld [vmem:[#allocation2 + $0x78] ss:$-80 sps:$4 sm:$0xff]  }
 0x435   : > { %1634 = vmatprep.subr.bf16.mxu0 %v1561_v4  ;;  %v1935_v20 = vmul.f32 %v2767_v45, %v4212_v27  ;;  %v1934_v47 = vmul.f32 %v2767_v45, %v4213_v17  ;;  %v1690_v4 = vld [vmem:[%s3910_s18 + $0x10] sm:$0xff]  ;;  %v2094_v45 = vld [vmem:[%s3916_s24] sm:$0xff] }
 0x436   : > { %1635 = vmatpush1.bf16.xpose.msra.mxu0 %v1560_v12 }
 0x437   : > { %v2769_v11 = vpop.eup %2768  ;;  %v1965_v25 = vpack.c.bf16 %v1937_v8, %v1935_v20  ;;  %v1964_v29 = vpack.c.bf16 %v1936_v49, %v1934_v47  ;;  %v1691_v47 = vld [vmem:[%s3910_s18 + $0x20] sm:$0xff] }
 0x438   : > { %v2771_v33 = vpop.eup %2770  ;;  %v1529_v9 = vmul.f32 %v2769_v11, %v4214_v6  ;;  %v1528_v35 = vmul.f32 %v2769_v11, %v4215_v13 }
 0x439   : > { %2039 = vmatprep.subr.bf16.mxu1 %v1965_v25  ;;  %v1527_v40 = vmul.f32 %v2771_v33, %v4216_v37  ;;  %v1526_v39 = vmul.f32 %v2771_v33, %v4217_v2  ;;  %v2095_v25 = vld [vmem:[%s3916_s24 + $0x10] sm:$0xff] }
 0x43a   : > { %2040 = vmatpush1.bf16.xpose.msra.mxu1 %v1964_v29 }
 0x43b   : > { %v2773_v28 = vpop.eup %2772  ;;  %v1559_v60 = vpack.c.bf16 %v1529_v9, %v1527_v40  ;;  %v1558_v53 = vpack.c.bf16 %v1528_v35, %v1526_v39  ;;  %v1692_v40 = vld [vmem:[%s3910_s18 + $0x30] sm:$0xff]  ;;  %v2096_v39 = vld [vmem:[%s3916_s24 + $0x20] sm:$0xff] }
 0x43c   : > { %v2775_v7 = vpop.eup %2774  ;;  %v1933_v3 = vmul.f32 %v2773_v28, %v4218_v22  ;;  %v1932_v38 = vmul.f32 %v2773_v28, %v4219_v46 }
 0x43d   : > { %1636 = vmatprep.subr.bf16.mxu0 %v1559_v60  ;;  %v1931_v43 = vmul.f32 %v2775_v7, %v4220_v24  ;;  %v1930_v44 = vmul.f32 %v2775_v7, %v4221_v50 }
 0x43e   : > { %1637 = vmatpush1.bf16.xpose.msra.mxu0 %v1558_v53 }
 0x43f   : > { %v1963_v42 = vpack.c.bf16 %v1933_v3, %v1931_v43  ;;  %v1962_v5 = vpack.c.bf16 %v1932_v38, %v1930_v44  ;;  %v1693_v38 = vld [vmem:[%s3910_s18 + $0x40] sm:$0xff]  ;;  %v2097_v43 = vld [vmem:[%s3916_s24 + $0x30] sm:$0xff] }
 0x441   : > { %2041 = vmatprep.subr.bf16.mxu1 %v1963_v42 }
 0x442   : > { %2042 = vmatpush1.bf16.xpose.msra.mxu1 %v1962_v5 }
 0x445   : > { %1655 = vmatmul.mubr.bf16.vlgmr.msra.gmra.mxu0 %v2569_v59 }
 0x446   : > { %1662 = vmatprep.mubr.bf16.mxu0 %v2387_v23  ;;  %v1694_v23 = vld [vmem:[%s3910_s18 + $0x50] sm:$0xff] }
 0x449   : > { %2060 = vmatmul.mubr.bf16.vlgmr.msra.gmra.mxu1 %v4224_v54 }
 0x44a   : > { %2067 = vmatprep.mubr.bf16.mxu1 %v2572_v0 }
 0x44d   : > { %1663 = vmatmul.mubr.bf16.gmra.mxu0 %v2386_v36 }
 0x44e   : > { %1670 = vmatprep.mubr.bf16.mxu0 %v2575_v1 }
 0x451   : > { %2068 = vmatmul.mubr.bf16.gmra.mxu1 %v2574_v32 }
 0x452   : > { %2075 = vmatprep.mubr.bf16.mxu1 %v2578_v15 }
 0x455   : > { %1671 = vmatmul.mubr.bf16.gmra.mxu0 %v2577_v63 }
 0x456   : > { %1678 = vmatprep.mubr.bf16.mxu0 %v2391_v30  ;;  %v2099_v30 = vld [vmem:[%s3916_s24 + $0x50] sm:$0xff] }
 0x459   : > { %2076 = vmatmul.mubr.bf16.gmra.mxu1 %v2580_v41 }
 0x45a   : > { %2083 = vmatprep.mubr.bf16.mxu1 %v2581_v56 }
 0x45d   : > { %1679 = vmatmul.mubr.bf16.gmra.mxu0 %v2390_v48 }
 0x461   : > { %2084 = vmatmul.mubr.bf16.gmra.mxu1 %v2583_v51 }
 0x505   : > { %v1656_v62 = vpop.f32.mrf.mxu0 }
 0x506   : > { %v1698_v52 = vmul.f32 %v3912_v19, %v1656_v62 }
 0x507   : > { %v1658_v21 = vpop.f32.mrf.mxu0 }
 0x508   : > { %v1706_v14 = vadd.f32 %v1698_v52, %v1689_v61  ;;  %v1696_v21 = vld [vmem:[%s3910_s18 + $0x70] sm:$0xff]  ;;  %s2804_s18 = scalar_lea.vmem %s3973_s6, 1024 }
 0x509   : > { %v1659_v10 = vpop.f32.mrf.mxu0  ;;  %v2061_v12 = vpop.f32.mrf.mxu1  ;;  %p2805_p5 = scmp.ne.s32.totalorder %s3973_s6, %s2804_s18  ;;  %p2812_p11 = scmp.lt.s32.totalorder %s2810_s23, %s2804_s18 }
 0x50a   : > { %1714 = vst [vmem:[%s3151_s22] sm:$0xff] %v1706_v14  ;;  %v1699_v57 = vmul.f32 %v3912_v19, %v1659_v10  ;;  %v2102_v8 = vmul.f32 %v2061_v12, %v3912_v19  ;;  %v2100_v10 = vld [vmem:[%s3916_s24 + $0x60] sm:$0xff] }
 0x50b   : > { %v1661_v18 = vpop.f32.mrf.mxu0  ;;  %v2063_v49 = vpop.f32.mrf.mxu1  ;;  %p2806_p8 = pnand %p2805_p5, %p3096_p12  ;;  %p2813_p13 = por %p2812_p11, %p2811_p10 }
 0x50c   : > { %v1707_v27 = vadd.f32 %v1699_v57, %v1690_v4  ;;  %v2110_v20 = vadd.f32 %v2102_v8, %v2094_v45 }
 0x50d   : > { %v1664_v17 = vpop.f32.mrf.mxu0  ;;  %v2064_v11 = vpop.f32.mrf.mxu1  ;;  %p2807_p9 = pneg %p2806_p8 }
 0x50e   : > { %1715 = vst [vmem:[%s3151_s22 + $0x8] sm:$0xff] %v1707_v27  ;;  %2118 = vst [vmem:[%s3153_s25] sm:$0xff] %v2110_v20  ;;  %v1700_v29 = vmul.f32 %v3912_v19, %v1664_v17  ;;  %v2103_v33 = vmul.f32 %v2064_v11, %v3912_v19  ;;  %v2101_v27 = vld [vmem:[%s3916_s24 + $0x70] sm:$0xff] }
 0x50f   : > { %v1666_v6 = vpop.f32.mrf.mxu0  ;;  %v2066_v9 = vpop.f32.mrf.mxu1  ;;  %p2814_p0 = pnand %p2813_p13, %p2807_p9 }
 0x510   : > { %v1708_v13 = vadd.f32 %v1700_v29, %v1691_v47  ;;  %v2111_v35 = vadd.f32 %v2103_v33, %v2095_v25 }
 0x511   : > { %v1667_v37 = vpop.f32.mrf.mxu0  ;;  %v2069_v2 = vpop.f32.mrf.mxu1 }
 0x512   : > { %1716 = vst [vmem:[%s3151_s22 + $0x10] sm:$0xff] %v1708_v13  ;;  %2119 = vst [vmem:[%s3153_s25 + $0x8] sm:$0xff] %v2111_v35  ;;  %v1701_v28 = vmul.f32 %v3912_v19, %v1667_v37  ;;  %v2104_v60 = vmul.f32 %v2069_v2, %v3912_v19 }
 0x513   : > { %v1669_v53 = vpop.f32.mrf.mxu0  ;;  %v2071_v7 = vpop.f32.mrf.mxu1 }
 0x514   : > { %v1709_v22 = vadd.f32 %v1701_v28, %v1692_v40  ;;  %v2112_v3 = vadd.f32 %v2104_v60, %v2096_v39 }
 0x515   : > { %v1672_v46 = vpop.f32.mrf.mxu0  ;;  %v2072_v24 = vpop.f32.mrf.mxu1 }
 0x516   : > { %1717 = vst [vmem:[%s3151_s22 + $0x18] sm:$0xff] %v1709_v22  ;;  %2120 = vst [vmem:[%s3153_s25 + $0x10] sm:$0xff] %v2112_v3  ;;  %v1702_v50 = vmul.f32 %v3912_v19, %v1672_v46  ;;  %v2105_v44 = vmul.f32 %v2072_v24, %v3912_v19 }
 0x517   : > { %v1674_v42 = vpop.f32.mrf.mxu0  ;;  %v2074_v5 = vpop.f32.mrf.mxu1 }
 0x518   : > { %v1710_v58 = vadd.f32 %v1702_v50, %v1693_v38  ;;  %v2113_v34 = vadd.f32 %v2105_v44, %v2097_v43 }
 0x519   : > { %v1675_v59 = vpop.f32.mrf.mxu0  ;;  %v2077_v0 = vpop.f32.mrf.mxu1 }
 0x51a   : > { %1718 = vst [vmem:[%s3151_s22 + $0x20] sm:$0xff] %v1710_v58  ;;  %2121 = vst [vmem:[%s3153_s25 + $0x18] sm:$0xff] %v2113_v34  ;;  %v1703_v26 = vmul.f32 %v3912_v19, %v1675_v59  ;;  %v2106_v54 = vmul.f32 %v2077_v0, %v3912_v19 }
 0x51b   : > { %v1677_v36 = vpop.f32.mrf.mxu0  ;;  %v2079_v1 = vpop.f32.mrf.mxu1 }
 0x51c   : > { %v1711_v32 = vadd.f32 %v1703_v26, %v1694_v23  ;;  %v2114_v15 = vadd.f32 %v2106_v54, %v2098_v31 }
 0x51d   : > { %v1680_v55 = vpop.f32.mrf.mxu0  ;;  %v2080_v63 = vpop.f32.mrf.mxu1 }
 0x51e   : > { %1719 = vst [vmem:[%s3151_s22 + $0x28] sm:$0xff] %v1711_v32  ;;  %2122 = vst [vmem:[%s3153_s25 + $0x20] sm:$0xff] %v2114_v15  ;;  %v1704_v41 = vmul.f32 %v3912_v19, %v1680_v55  ;;  %v2107_v56 = vmul.f32 %v2080_v63, %v3912_v19 }
 0x51f   : > { %v1682_v48 = vpop.f32.mrf.mxu0  ;;  %v2082_v51 = vpop.f32.mrf.mxu1 }
 0x520   : > { %v1712_v62 = vadd.f32 %v1704_v41, %v1695_v16  ;;  %v2115_v61 = vadd.f32 %v2107_v56, %v2099_v30 }
 0x521   : > { %v1683_v52 = vpop.f32.mrf.mxu0  ;;  %v2085_v14 = vpop.f32.mrf.mxu1 }
 0x522   : > { %1720 = vst [vmem:[%s3151_s22 + $0x30] sm:$0xff] %v1712_v62  ;;  %2123 = vst [vmem:[%s3153_s25 + $0x28] sm:$0xff] %v2115_v61  ;;  %v1705_v4 = vmul.f32 %v3912_v19, %v1683_v52  ;;  %v2108_v12 = vmul.f32 %v2085_v14, %v3912_v19 }
 0x523   : > { %v1685_v45 = vpop.f32.mrf.mxu0  ;;  %v2087_v57 = vpop.f32.mrf.mxu1 }
 0x524   : > { %v1713_v8 = vadd.f32 %v1705_v4, %v1696_v21  ;;  %v2116_v18 = vadd.f32 %v2108_v12, %v2100_v10 }
 0x525   : > { %v2088_v49 = vpop.f32.mrf.mxu1 }
 0x526   : > { %1721 = vst [vmem:[%s3151_s22 + $0x38] sm:$0xff] %v1713_v8  ;;  %2124 = vst [vmem:[%s3153_s25 + $0x30] sm:$0xff] %v2116_v18  ;;  %v2109_v20 = vmul.f32 %v2088_v49, %v3912_v19 }
 0x527   : > { %v2090_v17 = vpop.f32.mrf.mxu1 }
 0x528   : > { %2817 = shalt.err (!%p2814_p0)
}
 0x529   : > { %s2818_s22 = scalar_lea.hbm %s3971_s26, 1024  ;;  %s2822_s27 = scalar_lea.hbm %s4226_s17, 4096 }
 0x52a   : > { %p2819_p3 = scmp.ne.s32.totalorder %s3971_s26, %s2818_s22  ;;  %p2823_p4 = scmp.lt.s32.totalorder %s3971_s26, %s4226_s17 }
 0x52b   : > { %p2824_p7 = scmp.lt.s32.totalorder %s2822_s27, %s2818_s22 }
 0x52c   : > { %p2820_p1 = pnand %p2819_p3, %p3096_p12 }
 0x52d   : > { %p2825_p5 = por %p2824_p7, %p2823_p4 }
 0x52e   : > { %p2821_p6 = pneg %p2820_p1 }
 0x530   : > { %p2826_p8 = pnand %p2825_p5, %p2821_p6 }
 0x532   : > { %2829 = shalt.err (!%p2826_p8)
}
 0x533   : > { %s2962_s18 = smov 128   ;;  %s2963_s20 = smov 256   ;;  %v2117_v19 = vadd.f32 %v2109_v20, %v2101_v27 }
 0x534   : > { %s2964_s23 = smov 8   ;;  %s4228_s13 = sshll.u32 %s3950_s7, 7 }
 0x535   : > { %2436 = dma.vmem_to_hbm [thread:$0]  (%p3096_p12), %s3973_s6, 1024, %s3971_s26, %s2127_s21, %s2962_s18, %s2963_s20, %s2964_s23  }
 0x536   : > { %s4229_s24 = sld [smem:[#allocation43_spill]]  ;;  %s4230_s27 = sshll.u32 %s3153_s25, 4  ;;  %2125 = vst [vmem:[%s3153_s25 + $0x38] sm:$0xff] %v2117_v19  ;;  %s4015_s27 = int_to_ptr.vmem [resolvable:$true] %s4230_s27 }
 0x537   : > { %s2132_s1 = scalar_lea.sflag [#allocation11], %s3140_s8  ;;  %s2830_s2 = scalar_lea.vmem %s4015_s27, 1024 }
 0x538   : > { %p2831_p9 = scmp.ne.s32.totalorder %s4015_s27, %s2830_s2  ;;  %s2965_s6 = smov [#allocation10]  }
 0x539   : > { %s2834_s7 = sshll.u32 %s2965_s6, 4  ;;  %s2835_s7 = int_to_ptr.vmem [resolvable:$false] %s2834_s7 }
 0x53a   : > { %p2832_p10 = pnand %p2831_p9, %p3096_p12  ;;  %s2836_s26 = scalar_lea.vmem %s2835_s7, 2048 }
 0x53b   : > { %p2837_p13 = scmp.lt.s32.totalorder %s4015_s27, %s2835_s7  ;;  %p2838_p0 = scmp.lt.s32.totalorder %s2836_s26, %s2830_s2 }
 0x53c   : > { %s4011_s15 = scalar_lea.hbm %s4229_s24, %s4228_s13  ;;  %p2833_p11 = pneg %p2832_p10 }
 0x53d   : > { %p2839_p3 = por %p2838_p0, %p2837_p13 }
 0x53f   : > { %p2840_p1 = pnand %p2839_p3, %p2833_p11 }
 0x541   : > { %2843 = shalt.err (!%p2840_p1)
}
 0x542   : > { %s2844_s25 = scalar_lea.hbm %s4011_s15, 1024  ;;  %s2848_s13 = scalar_lea.hbm %s4229_s24, 4096 }
 0x543   : > { %p2845_p6 = scmp.ne.s32.totalorder %s4011_s15, %s2844_s25  ;;  %p2849_p5 = scmp.lt.s32.totalorder %s4011_s15, %s4229_s24 }
 0x544   : > { %p2850_p8 = scmp.lt.s32.totalorder %s2848_s13, %s2844_s25 }
 0x545   : > { %p2846_p4 = pnand %p2845_p6, %p3096_p12 }
 0x546   : > { %p2851_p9 = por %p2850_p8, %p2849_p5 }
 0x547   : > { %p2847_p7 = pneg %p2846_p4 }
 0x549   : > { %p2852_p10 = pnand %p2851_p9, %p2847_p7 }
 0x54b   : > { %2855 = shalt.err (!%p2852_p10)
}
 0x54c   : > { %2437 = dma.vmem_to_hbm [thread:$0]  (%p3096_p12), %s4015_s27, 1024, %s4011_s15, %s2132_s1, %s2962_s18, %s2963_s20, %s2964_s23  }
 0x54d PF: > { %p2452_p11 = scmp.ge.s32.totalorder %s2954_s16, 2  ;;  %s2178_s2 = sand.u32 1, %s2914_s29  }
 0x54e   : > { %s2179_s6 = scalar_lea.sflag [#allocation8], %s2178_s2 }
 0x54f   : > { %p2445_p13 = pnand %p2452_p11, %p3109_p2 }
 0x551   : > { %p2446_p0 = pneg %p2445_p13 }
 0x553   : > { %2905 = dma.done.wait (%p2446_p0), %s2179_s6, 1024  }
 0x554   : > { %2907 = vsyncadd (%p2446_p0), %s2179_s6, 4294966272  ;;  %s2188_s7 = scalar_lea.sflag [#allocation11], %s2178_s2 }
 0x555   : > { %2909 = dma.done.wait (%p2446_p0), %s2188_s7, 1024  }
 0x556   : > { %2911 = vsyncadd (%p2446_p0), %s2188_s7, 4294966272  ;;  %s29_s16 = sadd.s32 1, %s2954_s16   ;;  %s4231_s1 = smov %s3101_s10 }
 0x557   : > { %p26_p3 = scmp.ge.s32.totalorder %s29_s16, 6   ;;  %s4232_s13 = sld [smem:[#allocation15_spill]] }
 0x558   : > { %s4233_s6 = sld [smem:[#allocation16_spill]]  ;;  %s4236_s29 = smov %s2918_s30 }
 0x559   : > { %s4234_s14 = sld [smem:[#allocation17_spill]]  ;;  %s4237_s30 = smov %s2922_s9 }
 0x55a   : > { %s4235_s15 = sld [smem:[#allocation18_spill]]  ;;  %s4238_s9 = smov %s3104_s19 }
 0x55b   : > { %s4239_s10 = smov %s2930_s11  ;;  %s4240_s11 = smov %s2934_s12 }
 0x55c   : > { %s4241_s12 = smov %s4231_s1  ;;  %28 = sbr.rel (!%p26_p3) target bundleno = 18 (0x12), region = 122 }
 0x561   :  { %2193 = vsyncpa [#allocation7], 1 }
 0x562   :  { %2195 = vsyncpa [#allocation7 + $0x1], 1 }
 0x563   :  { %2196 = vsyncpa [#allocation8], 1 }
 0x564   :  { %2198 = vsyncpa [#allocation8 + $0x1], 1 }
 0x565   :  { %2199 = vsyncpa [#allocation11], 1 }
 0x566   :  { %2201 = vsyncpa [#allocation11 + $0x1], 1 }

</bundles_post_ra>
